<compile_context>
chip_gen: v7x
topology: tpu7x:2x2x1
jax: 0.10.0
libtpu: 0.0.40
codegen_flags: <defaults>
</compile_context>

<pallas_src>
import functools

import numpy as np
import jax
import jax.numpy as jnp
from jax.experimental import pallas as pl
from jax.experimental.pallas import tpu as pltpu


# ---------------- host-side spherical sampling geometry (numpy, matches ref) ----------------

def get_xy(delta_phi, delta_theta):
    return np.array([
        [(-np.tan(delta_theta), 1 / np.cos(delta_theta) * np.tan(delta_phi)),
         (0, np.tan(delta_phi)),
         (np.tan(delta_theta), 1 / np.cos(delta_theta) * np.tan(delta_phi))],
        [(-np.tan(delta_theta), 0), (1, 1), (np.tan(delta_theta), 0)],
        [(-np.tan(delta_theta), -1 / np.cos(delta_theta) * np.tan(delta_phi)),
         (0, -np.tan(delta_phi)),
         (np.tan(delta_theta), -1 / np.cos(delta_theta) * np.tan(delta_phi))]])


def cal_index(h, w, img_r, img_c):
    phi = -((img_r + 0.5) / h * np.pi - np.pi / 2)
    theta = (img_c + 0.5) / w * 2 * np.pi - np.pi
    delta_phi = np.pi / h
    delta_theta = 2 * np.pi / w
    xys = get_xy(delta_phi, delta_theta)
    x = xys[..., 0]
    y = xys[..., 1]
    rho = np.sqrt(x ** 2 + y ** 2)
    v = np.arctan(rho)
    with np.errstate(divide='ignore', invalid='ignore'):
        new_phi = np.arcsin(np.cos(v) * np.sin(phi) + y * np.sin(v) * np.cos(phi) / rho)
        new_theta = theta + np.arctan(
            x * np.sin(v) / (rho * np.cos(phi) * np.cos(v) - y * np.sin(phi) * np.sin(v)))
    new_r = (-new_phi + np.pi / 2) * h / np.pi - 0.5
    new_c = (new_theta + np.pi) * w / 2 / np.pi - 0.5
    new_c = (new_c + w) % w
    new_result = np.stack([new_r, new_c], axis=-1)
    new_result[1, 1] = (img_r, img_c)          # center tap is the identity sample
    return new_result


def gen_filters_coordinates(h, w, stride=1):
    co = np.array([[cal_index(h, w, i, j) for j in range(0, w, stride)]
                   for i in range(0, h, stride)])
    return np.ascontiguousarray(co.transpose([4, 0, 1, 2, 3]))


def gen_grid_coordinates(h, w, stride=1):
    coordinates = gen_filters_coordinates(h, w, stride).copy()
    coordinates[0] = coordinates[0] * 2 / h - 1
    coordinates[1] = coordinates[1] * 2 / w - 1
    coordinates = coordinates[::-1]
    coordinates = coordinates.transpose(1, 3, 2, 4, 0)
    sz = coordinates.shape
    coordinates = coordinates.reshape(1, sz[0] * sz[1], sz[2] * sz[3], sz[4])
    return coordinates.copy()


def _round_up(x, m):
    return ((x + m - 1) // m) * m


def _pick_block(total, cap):
    """Largest multiple of 128 that divides `total` (a 128-multiple) and is <= cap."""
    if total <= cap:
        return total
    best, b = 128, 128
    while b <= cap:
        if total % b == 0:
            best = b
        b += 128
    return best


@functools.lru_cache(maxsize=None)
def _dense_sampling_matrix(H, W, stride=1):
    """Dense (9, HW_p, Q_p) float32 bilinear sampling matrices, 128-padded.

    S[t][h*W + w, i*W_s + j] = bilinear weight of input pixel (h, w) for kernel
    tap t at output (i, j), reproducing grid_sample(mode='bilinear',
    padding_mode='zeros', align_corners=False) followed by MaxPool2d(3, 3).
    """
    grid = gen_grid_coordinates(H, W, stride)[0]            # (H_s*3, W_s*3, 2)
    H_s, W_s = grid.shape[0] // 3, grid.shape[1] // 3
    gx, gy = grid[..., 0], grid[..., 1]                      # x = width, y = height
    ix = ((gx + 1) * W - 1) * 0.5                            # align_corners=False
    iy = ((gy + 1) * H - 1) * 0.5
    ix = ix.reshape(H_s, 3, W_s, 3)
    iy = iy.reshape(H_s, 3, W_s, 3)

    HW, Q = H * W, H_s * W_s
    HW_p, Q_p = _round_up(HW, 128), _round_up(Q, 128)
    S = np.zeros((9, HW_p, Q_p), np.float32)
    qcols = np.arange(Q)

    for ki in range(3):
        for kj in range(3):
            t = ki * 3 + kj
            jx = ix[:, ki, :, kj].reshape(-1)
            jy = iy[:, ki, :, kj].reshape(-1)
            x0 = np.floor(jx).astype(np.int64)
            y0 = np.floor(jy).astype(np.int64)
            x1, y1 = x0 + 1, y0 + 1
            corners = (
                (y0, x0, (x1 - jx) * (y1 - jy)),
                (y0, x1, (jx - x0) * (y1 - jy)),
                (y1, x0, (x1 - jx) * (jy - y0)),
                (y1, x1, (jx - x0) * (jy - y0)),
            )
            for yc, xc, wgt in corners:
                valid = (xc >= 0) & (xc < W) & (yc >= 0) & (yc < H)
                src = yc * W + xc
                np.add.at(S[t], (src[valid], qcols[valid]), wgt[valid])
    return S, H_s, W_s


@functools.lru_cache(maxsize=None)
def _compact_sampling_tiles(H, W, stride, block_k, block_q):
    """Compacted sampling tiles + K-tile index table for the block-sparse kernel.

    Returns:
      S_c:  (nQ*NSTEPS, 9, block_k, block_q) bf16 — only nonzero (K,Q) tiles
            (all 9 taps together, contiguous DMA slabs); padding tiles are zero.
      ktab: (nQ*NSTEPS,) int32 — x K-tile index for grid step (j, n).
    """
    S, H_s, W_s = _dense_sampling_matrix(H, W, stride)
    _, HW_p, Q_p = S.shape
    nK, nQ = HW_p // block_k, Q_p // block_q

    nz = []
    for j in range(nQ):
        qs = S[:, :, j * block_q:(j + 1) * block_q]
        ks = [k for k in range(nK)
              if np.any(qs[:, k * block_k:(k + 1) * block_k, :])]
        nz.append(ks if ks else [0])
    nsteps = max(len(ks) for ks in nz)

    S_c = np.zeros((nQ * nsteps, 9, block_k, block_q), np.float32)
    ktab = np.zeros((nQ * nsteps,), np.int32)
    for j, ks in enumerate(nz):
        for n, k in enumerate(ks):
            S_c[j * nsteps + n] = S[:, k * block_k:(k + 1) * block_k,
                                    j * block_q:(j + 1) * block_q]
            ktab[j * nsteps + n] = k
        # entries n >= len(ks): S_c tile stays zero, ktab stays 0 (harmless pad)

    return (jnp.asarray(S_c, jnp.bfloat16), jnp.asarray(ktab, jnp.int32),
            H_s, W_s, nsteps)


# ---------------- Pallas kernel ----------------

def _sphere_pool_kernel(ktab_ref, x_ref, s_ref, o_ref, acc_ref):
    # ktab_ref: (nQ*NSTEPS,) int32 SMEM scalar-prefetch (used only by index_maps)
    # x_ref:    (BLOCK_NC, BLOCK_K)    bf16
    # s_ref:    (9, BLOCK_K, BLOCK_Q)  bf16  (all 9 taps of one compacted K tile)
    # o_ref:    (BLOCK_NC, BLOCK_Q)    f32/bf16 (revisited across the n axis)
    # acc_ref:  (9, BLOCK_NC, BLOCK_Q) f32 VMEM scratch (one accumulator per tap)
    del ktab_ref
    n = pl.program_id(2)

    @pl.when(n == 0)
    def _init():
        acc_ref[...] = jnp.zeros_like(acc_ref)

    x = x_ref[...]
    for t in range(9):                       # static unroll: x stays resident
        acc_ref[t] += jnp.dot(x, s_ref[t], preferred_element_type=jnp.float32)

    @pl.when(n == pl.num_programs(2) - 1)
    def _finalize():
        m = acc_ref[0]
        for t in range(1, 9):
            m = jnp.maximum(m, acc_ref[t])
        o_ref[...] = m.astype(o_ref.dtype)


# ---------------- host wrapper ----------------

@functools.lru_cache(maxsize=None)
def _vmem_budget_bytes():
    """Per-generation usable VMEM (v5e/v6e ~100 MiB, v7x ~56 MiB, safe fallback)."""
    phys = 64 << 20
    try:
        info = pltpu.get_tpu_info()
        phys = int(getattr(info, "vmem_capacity_bytes", phys)) or phys
    except Exception:
        pass
    return int(min(phys - (8 << 20), 100 << 20))


def _vmem_footprint(bnc, bk, bq, o_bytes):
    return (2 * bnc * bk * 2          # x tiles (bf16), double-buffered
            + 2 * 9 * bk * bq * 2     # S tiles (bf16, 9 taps), double-buffered
            + 2 * bnc * bq * o_bytes  # output tiles, double-buffered
            + 9 * bnc * bq * 4)       # f32 accumulators (scratch)


def sphere_max_pool_2d(x, stride=1, *, max_block_k=None, max_block_q=None):
    N, C, H, W = x.shape
    NC, HW = N * C, H * W
    HW_p = _round_up(HW, 128)
    H_s = len(range(0, H, stride))
    W_s = len(range(0, W, stride))
    Q = H_s * W_s
    Q_p = _round_up(Q, 128)

    out_dtype = jnp.bfloat16 if x.dtype == jnp.bfloat16 else jnp.float32
    o_bytes = 2 if out_dtype == jnp.bfloat16 else 4

    budget = _vmem_budget_bytes()

    # ---- tile plan (multiples of 128 on the lane/sublane-facing dims) ----
    q_cap = max_block_q or 512
    k_cap = max_block_k or (2048 if budget >= (90 << 20) else 1024)
    BLOCK_Q = _pick_block(Q_p, q_cap)
    BLOCK_K = _pick_block(HW_p, k_cap)
    if NC >= 512:
        BLOCK_NC = 512
    elif NC >= 256:
        BLOCK_NC = 256
    else:
        BLOCK_NC = 128

    while _vmem_footprint(BLOCK_NC, BLOCK_K, BLOCK_Q, o_bytes) + (6 << 20) > budget:
        if BLOCK_K > 128:
            BLOCK_K = _pick_block(HW_p, max(128, BLOCK_K // 2))
        elif BLOCK_NC > 128:
            BLOCK_NC //= 2
        elif BLOCK_Q > 128:
            BLOCK_Q = _pick_block(Q_p, max(128, BLOCK_Q // 2))
        else:
            break

    # v7x has 2 TensorCores: make the parallel (i, j) axes span >= 2 blocks.
    if _round_up(NC, BLOCK_NC) // BLOCK_NC == 1 and Q_p // BLOCK_Q == 1:
        if BLOCK_Q > 128:
            BLOCK_Q = _pick_block(Q_p, max(128, BLOCK_Q // 2))
        elif NC > 16:
            BLOCK_NC = max(16, _round_up((NC + 1) // 2, 16))
    NC_p = _round_up(NC, BLOCK_NC)

    # ---- compacted sampling tiles + scalar-prefetch K-tile table ----
    S_c, ktab, H_s2, W_s2, NSTEPS = _compact_sampling_tiles(
        H, W, stride, BLOCK_K, BLOCK_Q)
    assert (H_s2, W_s2) == (H_s, W_s)

    # ---- input prep (skip pad/cast when already aligned) ----
    x2d = x.reshape(NC, HW)
    if x2d.dtype != jnp.bfloat16:
        x2d = x2d.astype(jnp.bfloat16)
    if NC_p != NC or HW_p != HW:
        x2d = jnp.pad(x2d, ((0, NC_p - NC), (0, HW_p - HW)))

    grid = (NC_p // BLOCK_NC, Q_p // BLOCK_Q, NSTEPS)
    footprint = _vmem_footprint(BLOCK_NC, BLOCK_K, BLOCK_Q, o_bytes)
    vmem_limit = int(min(budget, max(32 << 20, footprint + (6 << 20))))

    nsteps = NSTEPS  # closure constant for the index maps

    def x_map(i, j, n, kt):
        # data-dependent K tile: only nonzero tiles of this Q tile are visited
        return (i, kt[j * nsteps + n])

    def s_map(i, j, n, kt):
        return (j * nsteps + n, 0, 0, 0)

    def o_map(i, j, n, kt):
        return (i, j)

    out = pl.pallas_call(
        _sphere_pool_kernel,
        out_shape=jax.ShapeDtypeStruct((NC_p, Q_p), out_dtype),
        grid_spec=pltpu.PrefetchScalarGridSpec(
            num_scalar_prefetch=1,
            grid=grid,
            in_specs=[
                pl.BlockSpec((BLOCK_NC, BLOCK_K), x_map),
                # compacted S: one contiguous (9, BLOCK_K, BLOCK_Q) slab / step
                pl.BlockSpec((pl.Squeezed(), 9, BLOCK_K, BLOCK_Q), s_map),
            ],
            # output block revisited across the sparse-K axis; single HBM
            # writeback when (i, j) changes.
            out_specs=pl.BlockSpec((BLOCK_NC, BLOCK_Q), o_map),
            scratch_shapes=[pltpu.VMEM((9, BLOCK_NC, BLOCK_Q), jnp.float32)],
        ),
        compiler_params=pltpu.CompilerParams(
            dimension_semantics=("parallel", "parallel", "arbitrary"),
            vmem_limit_bytes=vmem_limit),
    )(ktab, x2d, S_c)

    if NC_p != NC or Q_p != Q:
        out = out[:NC, :Q]
    y = out.reshape(N, C, H_s, W_s)
    if y.dtype != x.dtype:
        y = y.astype(x.dtype)
    return y


class SphereMaxPool2D:
    """Pallas/TPU reimplementation of SphereNet's SphereMaxPool2D (3x3 filter only)."""

    def __init__(self, stride=1, mode='bilinear'):
        assert mode == 'bilinear', "only bilinear grid_sample is supported"
        self.stride = stride

    def __call__(self, x):
        # per-(H, W, stride, tile-plan) geometry is memoized via lru_cache
        return sphere_max_pool_2d(x, self.stride)


# ---------------- pure numpy reference (same bf16-rounded operands) ----------------

def _reference_pool(x, stride=1):
    N, C, H, W = x.shape
    S, H_s, W_s = _dense_sampling_matrix(H, W, stride)
    HW, Q = H * W, H_s * W_s
    S_bf = np.asarray(jnp.asarray(S[:, :HW, :Q], jnp.bfloat16).astype(jnp.float32),
                      dtype=np.float64)
    x_bf = np.asarray(jnp.asarray(np.asarray(x).reshape(N * C, HW),
                                  jnp.bfloat16).astype(jnp.float32),
                      dtype=np.float64)
    per_tap = np.einsum('nk,tkq->tnq', x_bf, S_bf)
    return per_tap.max(axis=0).reshape(N, C, H_s, W_s)


if __name__ == "__main__":
    key = jax.random.PRNGKey(0)
    N, C, H, W = 2, 4, 16, 16
    x = jax.random.normal(key, (N, C, H, W), dtype=jnp.float32)

    pool = SphereMaxPool2D(stride=1, mode='bilinear')
    y = jax.block_until_ready(pool(x))

    assert y.shape == (N, C, H, W), y.shape          # stride=1 -> same spatial size
    assert y.dtype == jnp.float32
    assert bool(jnp.all(jnp.isfinite(y)))

    y_ref = _reference_pool(x, stride=1)
    err = float(np.max(np.abs(np.asarray(y, np.float64) - y_ref)))
    assert np.allclose(np.asarray(y, np.float64), y_ref, atol=2e-2, rtol=2e-2), err

    # Exercise the block-sparse multi-K-tile path (scalar-prefetched K table).
    y2 = jax.block_until_ready(
        sphere_max_pool_2d(x, stride=1, max_block_k=128, max_block_q=128))
    err2 = float(np.max(np.abs(np.asarray(y2, np.float64) - y_ref)))
    assert np.allclose(np.asarray(y2, np.float64), y_ref, atol=2e-2, rtol=2e-2), err2

    print("KERNEL_OK")
</pallas_src>

<mosaic_0001>
module attributes {stable_mosaic.version = 11 : i64} {
  func.func @_sphere_pool_kernel(%arg0: i32, %arg1: i32, %arg2: i32, %arg3: memref<2xi32, #tpu.memory_space<smem>>, %arg4: memref<128x256xbf16, #tpu.memory_space<vmem>>, %arg5: memref<1x9x256x128xbf16, #tpu.memory_space<vmem>>, %arg6: memref<128x128xf32, #tpu.memory_space<vmem>>, %arg7: memref<9x128x128xf32, #tpu.memory_space<vmem>>) attributes {dimension_semantics = [#tpu.dimension_semantics<parallel>, #tpu.dimension_semantics<parallel>, #tpu.dimension_semantics<arbitrary>], iteration_bounds = array<i64: 1, 2, 1>, scalar_prefetch = 1 : i64, scratch_operands = 1 : i64, tpu.core_type = #tpu.core_type<tc>, window_params = [{transform_indices = @transform_0, window_bounds = array<i64: 128, 256>}, {transform_indices = @transform_1, window_bounds = array<i64: 1, 9, 256, 128>}, {transform_indices = @transform_2, window_bounds = array<i64: 128, 128>}]} {
    %c0_i32 = arith.constant 0 : i32
    %0 = arith.cmpi eq, %arg2, %c0_i32 : i32
    %1 = arith.extui %0 : i1 to i32
    %c0_i32_0 = arith.constant 0 : i32
    %2 = arith.cmpi ne, %1, %c0_i32_0 : i32
    scf.if %2 {
      %cst_94 = arith.constant 0.000000e+00 : f32
      %88 = vector.broadcast %cst_94 : f32 to vector<9x128x128xf32>
      %c0_95 = arith.constant 0 : index
      %c0_96 = arith.constant 0 : index
      %c0_97 = arith.constant 0 : index
      %89 = vector.load %arg7[%c0_95, %c0_96, %c0_97] : memref<9x128x128xf32, #tpu.memory_space<vmem>>, vector<9x128x128xf32>
      tpu.vector_store %arg7[%c0_95, %c0_96, %c0_97], %88 {strides = array<i32>} : memref<9x128x128xf32, #tpu.memory_space<vmem>>, vector<9x128x128xf32>,
    } else {
    }
    %c0 = arith.constant 0 : index
    %c0_1 = arith.constant 0 : index
    %3 = vector.load %arg4[%c0, %c0_1] : memref<128x256xbf16, #tpu.memory_space<vmem>>, vector<128x256xbf16>
    %c0_2 = arith.constant 0 : index
    %c0_3 = arith.constant 0 : index
    %c0_4 = arith.constant 0 : index
    %4 = vector.load %arg7[%c0_2, %c0_3, %c0_4] : memref<9x128x128xf32, #tpu.memory_space<vmem>>, vector<1x128x128xf32>
    %5 = vector.shape_cast %4 : vector<1x128x128xf32> to vector<128x128xf32>
    %c0_5 = arith.constant 0 : index
    %c0_6 = arith.constant 0 : index
    %c0_7 = arith.constant 0 : index
    %c0_8 = arith.constant 0 : index
    %6 = vector.load %arg5[%c0_5, %c0_6, %c0_7, %c0_8] : memref<1x9x256x128xbf16, #tpu.memory_space<vmem>>, vector<1x1x256x128xbf16>
    %7 = vector.shape_cast %6 : vector<1x1x256x128xbf16> to vector<256x128xbf16>
    %cst = arith.constant dense<0.000000e+00> : vector<128x128xf32>
    %8 = tpu.matmul %3, %7, %cst {dimension_numbers = #tpu.dot_dimension_numbers<[1], [0], [0], [1], [0, 0, 1, 1], [], []>} : vector<128x256xbf16>, vector<256x128xbf16>, vector<128x128xf32> -> vector<128x128xf32>
    %9 = arith.addf %5, %8 : vector<128x128xf32>
    %c0_9 = arith.constant 0 : index
    %c0_10 = arith.constant 0 : index
    %c0_11 = arith.constant 0 : index
    %10 = vector.load %arg7[%c0_9, %c0_10, %c0_11] : memref<9x128x128xf32, #tpu.memory_space<vmem>>, vector<1x128x128xf32>
    %11 = vector.shape_cast %10 : vector<1x128x128xf32> to vector<128x128xf32>
    %12 = vector.shape_cast %9 : vector<128x128xf32> to vector<1x128x128xf32>
    tpu.vector_store %arg7[%c0_9, %c0_10, %c0_11], %12 {strides = array<i32>} : memref<9x128x128xf32, #tpu.memory_space<vmem>>, vector<1x128x128xf32>,
    %c1 = arith.constant 1 : index
    %c0_12 = arith.constant 0 : index
    %c0_13 = arith.constant 0 : index
    %13 = vector.load %arg7[%c1, %c0_12, %c0_13] : memref<9x128x128xf32, #tpu.memory_space<vmem>>, vector<1x128x128xf32>
    %14 = vector.shape_cast %13 : vector<1x128x128xf32> to vector<128x128xf32>
    %c0_14 = arith.constant 0 : index
    %c1_15 = arith.constant 1 : index
    %c0_16 = arith.constant 0 : index
    %c0_17 = arith.constant 0 : index
    %15 = vector.load %arg5[%c0_14, %c1_15, %c0_16, %c0_17] : memref<1x9x256x128xbf16, #tpu.memory_space<vmem>>, vector<1x1x256x128xbf16>
    %16 = vector.shape_cast %15 : vector<1x1x256x128xbf16> to vector<256x128xbf16>
    %cst_18 = arith.constant dense<0.000000e+00> : vector<128x128xf32>
    %17 = tpu.matmul %3, %16, %cst_18 {dimension_numbers = #tpu.dot_dimension_numbers<[1], [0], [0], [1], [0, 0, 1, 1], [], []>} : vector<128x256xbf16>, vector<256x128xbf16>, vector<128x128xf32> -> vector<128x128xf32>
    %18 = arith.addf %14, %17 : vector<128x128xf32>
    %c1_19 = arith.constant 1 : index
    %c0_20 = arith.constant 0 : index
    %c0_21 = arith.constant 0 : index
    %19 = vector.load %arg7[%c1_19, %c0_20, %c0_21] : memref<9x128x128xf32, #tpu.memory_space<vmem>>, vector<1x128x128xf32>
    %20 = vector.shape_cast %19 : vector<1x128x128xf32> to vector<128x128xf32>
    %21 = vector.shape_cast %18 : vector<128x128xf32> to vector<1x128x128xf32>
    tpu.vector_store %arg7[%c1_19, %c0_20, %c0_21], %21 {strides = array<i32>} : memref<9x128x128xf32, #tpu.memory_space<vmem>>, vector<1x128x128xf32>,
    %c2 = arith.constant 2 : index
    %c0_22 = arith.constant 0 : index
    %c0_23 = arith.constant 0 : index
    %22 = vector.load %arg7[%c2, %c0_22, %c0_23] : memref<9x128x128xf32, #tpu.memory_space<vmem>>, vector<1x128x128xf32>
    %23 = vector.shape_cast %22 : vector<1x128x128xf32> to vector<128x128xf32>
    %c0_24 = arith.constant 0 : index
    %c2_25 = arith.constant 2 : index
    %c0_26 = arith.constant 0 : index
    %c0_27 = arith.constant 0 : index
    %24 = vector.load %arg5[%c0_24, %c2_25, %c0_26, %c0_27] : memref<1x9x256x128xbf16, #tpu.memory_space<vmem>>, vector<1x1x256x128xbf16>
    %25 = vector.shape_cast %24 : vector<1x1x256x128xbf16> to vector<256x128xbf16>
    %cst_28 = arith.constant dense<0.000000e+00> : vector<128x128xf32>
    %26 = tpu.matmul %3, %25, %cst_28 {dimension_numbers = #tpu.dot_dimension_numbers<[1], [0], [0], [1], [0, 0, 1, 1], [], []>} : vector<128x256xbf16>, vector<256x128xbf16>, vector<128x128xf32> -> vector<128x128xf32>
    %27 = arith.addf %23, %26 : vector<128x128xf32>
    %c2_29 = arith.constant 2 : index
    %c0_30 = arith.constant 0 : index
    %c0_31 = arith.constant 0 : index
    %28 = vector.load %arg7[%c2_29, %c0_30, %c0_31] : memref<9x128x128xf32, #tpu.memory_space<vmem>>, vector<1x128x128xf32>
    %29 = vector.shape_cast %28 : vector<1x128x128xf32> to vector<128x128xf32>
    %30 = vector.shape_cast %27 : vector<128x128xf32> to vector<1x128x128xf32>
    tpu.vector_store %arg7[%c2_29, %c0_30, %c0_31], %30 {strides = array<i32>} : memref<9x128x128xf32, #tpu.memory_space<vmem>>, vector<1x128x128xf32>,
    %c3 = arith.constant 3 : index
    %c0_32 = arith.constant 0 : index
    %c0_33 = arith.constant 0 : index
    %31 = vector.load %arg7[%c3, %c0_32, %c0_33] : memref<9x128x128xf32, #tpu.memory_space<vmem>>, vector<1x128x128xf32>
    %32 = vector.shape_cast %31 : vector<1x128x128xf32> to vector<128x128xf32>
    %c0_34 = arith.constant 0 : index
    %c3_35 = arith.constant 3 : index
    %c0_36 = arith.constant 0 : index
    %c0_37 = arith.constant 0 : index
    %33 = vector.load %arg5[%c0_34, %c3_35, %c0_36, %c0_37] : memref<1x9x256x128xbf16, #tpu.memory_space<vmem>>, vector<1x1x256x128xbf16>
    %34 = vector.shape_cast %33 : vector<1x1x256x128xbf16> to vector<256x128xbf16>
    %cst_38 = arith.constant dense<0.000000e+00> : vector<128x128xf32>
    %35 = tpu.matmul %3, %34, %cst_38 {dimension_numbers = #tpu.dot_dimension_numbers<[1], [0], [0], [1], [0, 0, 1, 1], [], []>} : vector<128x256xbf16>, vector<256x128xbf16>, vector<128x128xf32> -> vector<128x128xf32>
    %36 = arith.addf %32, %35 : vector<128x128xf32>
    %c3_39 = arith.constant 3 : index
    %c0_40 = arith.constant 0 : index
    %c0_41 = arith.constant 0 : index
    %37 = vector.load %arg7[%c3_39, %c0_40, %c0_41] : memref<9x128x128xf32, #tpu.memory_space<vmem>>, vector<1x128x128xf32>
    %38 = vector.shape_cast %37 : vector<1x128x128xf32> to vector<128x128xf32>
    %39 = vector.shape_cast %36 : vector<128x128xf32> to vector<1x128x128xf32>
    tpu.vector_store %arg7[%c3_39, %c0_40, %c0_41], %39 {strides = array<i32>} : memref<9x128x128xf32, #tpu.memory_space<vmem>>, vector<1x128x128xf32>,
    %c4 = arith.constant 4 : index
    %c0_42 = arith.constant 0 : index
    %c0_43 = arith.constant 0 : index
    %40 = vector.load %arg7[%c4, %c0_42, %c0_43] : memref<9x128x128xf32, #tpu.memory_space<vmem>>, vector<1x128x128xf32>
    %41 = vector.shape_cast %40 : vector<1x128x128xf32> to vector<128x128xf32>
    %c0_44 = arith.constant 0 : index
    %c4_45 = arith.constant 4 : index
    %c0_46 = arith.constant 0 : index
    %c0_47 = arith.constant 0 : index
    %42 = vector.load %arg5[%c0_44, %c4_45, %c0_46, %c0_47] : memref<1x9x256x128xbf16, #tpu.memory_space<vmem>>, vector<1x1x256x128xbf16>
    %43 = vector.shape_cast %42 : vector<1x1x256x128xbf16> to vector<256x128xbf16>
    %cst_48 = arith.constant dense<0.000000e+00> : vector<128x128xf32>
    %44 = tpu.matmul %3, %43, %cst_48 {dimension_numbers = #tpu.dot_dimension_numbers<[1], [0], [0], [1], [0, 0, 1, 1], [], []>} : vector<128x256xbf16>, vector<256x128xbf16>, vector<128x128xf32> -> vector<128x128xf32>
    %45 = arith.addf %41, %44 : vector<128x128xf32>
    %c4_49 = arith.constant 4 : index
    %c0_50 = arith.constant 0 : index
    %c0_51 = arith.constant 0 : index
    %46 = vector.load %arg7[%c4_49, %c0_50, %c0_51] : memref<9x128x128xf32, #tpu.memory_space<vmem>>, vector<1x128x128xf32>
    %47 = vector.shape_cast %46 : vector<1x128x128xf32> to vector<128x128xf32>
    %48 = vector.shape_cast %45 : vector<128x128xf32> to vector<1x128x128xf32>
    tpu.vector_store %arg7[%c4_49, %c0_50, %c0_51], %48 {strides = array<i32>} : memref<9x128x128xf32, #tpu.memory_space<vmem>>, vector<1x128x128xf32>,
    %c5 = arith.constant 5 : index
    %c0_52 = arith.constant 0 : index
    %c0_53 = arith.constant 0 : index
    %49 = vector.load %arg7[%c5, %c0_52, %c0_53] : memref<9x128x128xf32, #tpu.memory_space<vmem>>, vector<1x128x128xf32>
    %50 = vector.shape_cast %49 : vector<1x128x128xf32> to vector<128x128xf32>
    %c0_54 = arith.constant 0 : index
    %c5_55 = arith.constant 5 : index
    %c0_56 = arith.constant 0 : index
    %c0_57 = arith.constant 0 : index
    %51 = vector.load %arg5[%c0_54, %c5_55, %c0_56, %c0_57] : memref<1x9x256x128xbf16, #tpu.memory_space<vmem>>, vector<1x1x256x128xbf16>
    %52 = vector.shape_cast %51 : vector<1x1x256x128xbf16> to vector<256x128xbf16>
    %cst_58 = arith.constant dense<0.000000e+00> : vector<128x128xf32>
    %53 = tpu.matmul %3, %52, %cst_58 {dimension_numbers = #tpu.dot_dimension_numbers<[1], [0], [0], [1], [0, 0, 1, 1], [], []>} : vector<128x256xbf16>, vector<256x128xbf16>, vector<128x128xf32> -> vector<128x128xf32>
    %54 = arith.addf %50, %53 : vector<128x128xf32>
    %c5_59 = arith.constant 5 : index
    %c0_60 = arith.constant 0 : index
    %c0_61 = arith.constant 0 : index
    %55 = vector.load %arg7[%c5_59, %c0_60, %c0_61] : memref<9x128x128xf32, #tpu.memory_space<vmem>>, vector<1x128x128xf32>
    %56 = vector.shape_cast %55 : vector<1x128x128xf32> to vector<128x128xf32>
    %57 = vector.shape_cast %54 : vector<128x128xf32> to vector<1x128x128xf32>
    tpu.vector_store %arg7[%c5_59, %c0_60, %c0_61], %57 {strides = array<i32>} : memref<9x128x128xf32, #tpu.memory_space<vmem>>, vector<1x128x128xf32>,
    %c6 = arith.constant 6 : index
    %c0_62 = arith.constant 0 : index
    %c0_63 = arith.constant 0 : index
    %58 = vector.load %arg7[%c6, %c0_62, %c0_63] : memref<9x128x128xf32, #tpu.memory_space<vmem>>, vector<1x128x128xf32>
    %59 = vector.shape_cast %58 : vector<1x128x128xf32> to vector<128x128xf32>
    %c0_64 = arith.constant 0 : index
    %c6_65 = arith.constant 6 : index
    %c0_66 = arith.constant 0 : index
    %c0_67 = arith.constant 0 : index
    %60 = vector.load %arg5[%c0_64, %c6_65, %c0_66, %c0_67] : memref<1x9x256x128xbf16, #tpu.memory_space<vmem>>, vector<1x1x256x128xbf16>
    %61 = vector.shape_cast %60 : vector<1x1x256x128xbf16> to vector<256x128xbf16>
    %cst_68 = arith.constant dense<0.000000e+00> : vector<128x128xf32>
    %62 = tpu.matmul %3, %61, %cst_68 {dimension_numbers = #tpu.dot_dimension_numbers<[1], [0], [0], [1], [0, 0, 1, 1], [], []>} : vector<128x256xbf16>, vector<256x128xbf16>, vector<128x128xf32> -> vector<128x128xf32>
    %63 = arith.addf %59, %62 : vector<128x128xf32>
    %c6_69 = arith.constant 6 : index
    %c0_70 = arith.constant 0 : index
    %c0_71 = arith.constant 0 : index
    %64 = vector.load %arg7[%c6_69, %c0_70, %c0_71] : memref<9x128x128xf32, #tpu.memory_space<vmem>>, vector<1x128x128xf32>
    %65 = vector.shape_cast %64 : vector<1x128x128xf32> to vector<128x128xf32>
    %66 = vector.shape_cast %63 : vector<128x128xf32> to vector<1x128x128xf32>
    tpu.vector_store %arg7[%c6_69, %c0_70, %c0_71], %66 {strides = array<i32>} : memref<9x128x128xf32, #tpu.memory_space<vmem>>, vector<1x128x128xf32>,
    %c7 = arith.constant 7 : index
    %c0_72 = arith.constant 0 : index
    %c0_73 = arith.constant 0 : index
    %67 = vector.load %arg7[%c7, %c0_72, %c0_73] : memref<9x128x128xf32, #tpu.memory_space<vmem>>, vector<1x128x128xf32>
    %68 = vector.shape_cast %67 : vector<1x128x128xf32> to vector<128x128xf32>
    %c0_74 = arith.constant 0 : index
    %c7_75 = arith.constant 7 : index
    %c0_76 = arith.constant 0 : index
    %c0_77 = arith.constant 0 : index
    %69 = vector.load %arg5[%c0_74, %c7_75, %c0_76, %c0_77] : memref<1x9x256x128xbf16, #tpu.memory_space<vmem>>, vector<1x1x256x128xbf16>
    %70 = vector.shape_cast %69 : vector<1x1x256x128xbf16> to vector<256x128xbf16>
    %cst_78 = arith.constant dense<0.000000e+00> : vector<128x128xf32>
    %71 = tpu.matmul %3, %70, %cst_78 {dimension_numbers = #tpu.dot_dimension_numbers<[1], [0], [0], [1], [0, 0, 1, 1], [], []>} : vector<128x256xbf16>, vector<256x128xbf16>, vector<128x128xf32> -> vector<128x128xf32>
    %72 = arith.addf %68, %71 : vector<128x128xf32>
    %c7_79 = arith.constant 7 : index
    %c0_80 = arith.constant 0 : index
    %c0_81 = arith.constant 0 : index
    %73 = vector.load %arg7[%c7_79, %c0_80, %c0_81] : memref<9x128x128xf32, #tpu.memory_space<vmem>>, vector<1x128x128xf32>
    %74 = vector.shape_cast %73 : vector<1x128x128xf32> to vector<128x128xf32>
    %75 = vector.shape_cast %72 : vector<128x128xf32> to vector<1x128x128xf32>
    tpu.vector_store %arg7[%c7_79, %c0_80, %c0_81], %75 {strides = array<i32>} : memref<9x128x128xf32, #tpu.memory_space<vmem>>, vector<1x128x128xf32>,
    %c8 = arith.constant 8 : index
    %c0_82 = arith.constant 0 : index
    %c0_83 = arith.constant 0 : index
    %76 = vector.load %arg7[%c8, %c0_82, %c0_83] : memref<9x128x128xf32, #tpu.memory_space<vmem>>, vector<1x128x128xf32>
    %77 = vector.shape_cast %76 : vector<1x128x128xf32> to vector<128x128xf32>
    %c0_84 = arith.constant 0 : index
    %c8_85 = arith.constant 8 : index
    %c0_86 = arith.constant 0 : index
    %c0_87 = arith.constant 0 : index
    %78 = vector.load %arg5[%c0_84, %c8_85, %c0_86, %c0_87] : memref<1x9x256x128xbf16, #tpu.memory_space<vmem>>, vector<1x1x256x128xbf16>
    %79 = vector.shape_cast %78 : vector<1x1x256x128xbf16> to vector<256x128xbf16>
    %cst_88 = arith.constant dense<0.000000e+00> : vector<128x128xf32>
    %80 = tpu.matmul %3, %79, %cst_88 {dimension_numbers = #tpu.dot_dimension_numbers<[1], [0], [0], [1], [0, 0, 1, 1], [], []>} : vector<128x256xbf16>, vector<256x128xbf16>, vector<128x128xf32> -> vector<128x128xf32>
    %81 = arith.addf %77, %80 : vector<128x128xf32>
    %c8_89 = arith.constant 8 : index
    %c0_90 = arith.constant 0 : index
    %c0_91 = arith.constant 0 : index
    %82 = vector.load %arg7[%c8_89, %c0_90, %c0_91] : memref<9x128x128xf32, #tpu.memory_space<vmem>>, vector<1x128x128xf32>
    %83 = vector.shape_cast %82 : vector<1x128x128xf32> to vector<128x128xf32>
    %84 = vector.shape_cast %81 : vector<128x128xf32> to vector<1x128x128xf32>
    tpu.vector_store %arg7[%c8_89, %c0_90, %c0_91], %84 {strides = array<i32>} : memref<9x128x128xf32, #tpu.memory_space<vmem>>, vector<1x128x128xf32>,
    %c0_i32_92 = arith.constant 0 : i32
    %85 = arith.cmpi eq, %arg2, %c0_i32_92 : i32
    %86 = arith.extui %85 : i1 to i32
    %c0_i32_93 = arith.constant 0 : i32
    %87 = arith.cmpi ne, %86, %c0_i32_93 : i32
    scf.if %87 {
      %c0_94 = arith.constant 0 : index
      %c0_95 = arith.constant 0 : index
      %c0_96 = arith.constant 0 : index
      %88 = vector.load %arg7[%c0_94, %c0_95, %c0_96] : memref<9x128x128xf32, #tpu.memory_space<vmem>>, vector<1x128x128xf32>
      %89 = vector.shape_cast %88 : vector<1x128x128xf32> to vector<128x128xf32>
      %c1_97 = arith.constant 1 : index
      %c0_98 = arith.constant 0 : index
      %c0_99 = arith.constant 0 : index
      %90 = vector.load %arg7[%c1_97, %c0_98, %c0_99] : memref<9x128x128xf32, #tpu.memory_space<vmem>>, vector<1x128x128xf32>
      %91 = vector.shape_cast %90 : vector<1x128x128xf32> to vector<128x128xf32>
      %92 = arith.maximumf %89, %91 : vector<128x128xf32>
      %c2_100 = arith.constant 2 : index
      %c0_101 = arith.constant 0 : index
      %c0_102 = arith.constant 0 : index
      %93 = vector.load %arg7[%c2_100, %c0_101, %c0_102] : memref<9x128x128xf32, #tpu.memory_space<vmem>>, vector<1x128x128xf32>
      %94 = vector.shape_cast %93 : vector<1x128x128xf32> to vector<128x128xf32>
      %95 = arith.maximumf %92, %94 : vector<128x128xf32>
      %c3_103 = arith.constant 3 : index
      %c0_104 = arith.constant 0 : index
      %c0_105 = arith.constant 0 : index
      %96 = vector.load %arg7[%c3_103, %c0_104, %c0_105] : memref<9x128x128xf32, #tpu.memory_space<vmem>>, vector<1x128x128xf32>
      %97 = vector.shape_cast %96 : vector<1x128x128xf32> to vector<128x128xf32>
      %98 = arith.maximumf %95, %97 : vector<128x128xf32>
      %c4_106 = arith.constant 4 : index
      %c0_107 = arith.constant 0 : index
      %c0_108 = arith.constant 0 : index
      %99 = vector.load %arg7[%c4_106, %c0_107, %c0_108] : memref<9x128x128xf32, #tpu.memory_space<vmem>>, vector<1x128x128xf32>
      %100 = vector.shape_cast %99 : vector<1x128x128xf32> to vector<128x128xf32>
      %101 = arith.maximumf %98, %100 : vector<128x128xf32>
      %c5_109 = arith.constant 5 : index
      %c0_110 = arith.constant 0 : index
      %c0_111 = arith.constant 0 : index
      %102 = vector.load %arg7[%c5_109, %c0_110, %c0_111] : memref<9x128x128xf32, #tpu.memory_space<vmem>>, vector<1x128x128xf32>
      %103 = vector.shape_cast %102 : vector<1x128x128xf32> to vector<128x128xf32>
      %104 = arith.maximumf %101, %103 : vector<128x128xf32>
      %c6_112 = arith.constant 6 : index
      %c0_113 = arith.constant 0 : index
      %c0_114 = arith.constant 0 : index
      %105 = vector.load %arg7[%c6_112, %c0_113, %c0_114] : memref<9x128x128xf32, #tpu.memory_space<vmem>>, vector<1x128x128xf32>
      %106 = vector.shape_cast %105 : vector<1x128x128xf32> to vector<128x128xf32>
      %107 = arith.maximumf %104, %106 : vector<128x128xf32>
      %c7_115 = arith.constant 7 : index
      %c0_116 = arith.constant 0 : index
      %c0_117 = arith.constant 0 : index
      %108 = vector.load %arg7[%c7_115, %c0_116, %c0_117] : memref<9x128x128xf32, #tpu.memory_space<vmem>>, vector<1x128x128xf32>
      %109 = vector.shape_cast %108 : vector<1x128x128xf32> to vector<128x128xf32>
      %110 = arith.maximumf %107, %109 : vector<128x128xf32>
      %c8_118 = arith.constant 8 : index
      %c0_119 = arith.constant 0 : index
      %c0_120 = arith.constant 0 : index
      %111 = vector.load %arg7[%c8_118, %c0_119, %c0_120] : memref<9x128x128xf32, #tpu.memory_space<vmem>>, vector<1x128x128xf32>
      %112 = vector.shape_cast %111 : vector<1x128x128xf32> to vector<128x128xf32>
      %113 = arith.maximumf %110, %112 : vector<128x128xf32>
      %c0_121 = arith.constant 0 : index
      %c0_122 = arith.constant 0 : index
      %114 = vector.load %arg6[%c0_121, %c0_122] : memref<128x128xf32, #tpu.memory_space<vmem>>, vector<128x128xf32>
      tpu.vector_store %arg6[%c0_121, %c0_122], %113 {strides = array<i32>} : memref<128x128xf32, #tpu.memory_space<vmem>>, vector<128x128xf32>,
    } else {
    }
    return
  }
  func.func @transform_0(%arg0: i32, %arg1: i32, %arg2: i32, %arg3: memref<2xi32, #tpu.memory_space<smem>>) -> (i32, i32) {
    %c1_i32 = arith.constant 1 : i32
    %0 = arith.muli %arg1, %c1_i32 : i32
    %1 = arith.addi %0, %arg2 : i32
    %2 = arith.index_cast %1 : i32 to index
    %3 = memref.load %arg3[%2] : memref<2xi32, #tpu.memory_space<smem>>
    %c0_i32 = arith.constant 0 : i32
    return %arg0, %3 : i32, i32
  }
  func.func @transform_1(%arg0: i32, %arg1: i32, %arg2: i32, %arg3: memref<2xi32, #tpu.memory_space<smem>>) -> (i32, i32, i32, i32) {
    %c1_i32 = arith.constant 1 : i32
    %0 = arith.muli %arg1, %c1_i32 : i32
    %1 = arith.addi %0, %arg2 : i32
    %c0_i32 = arith.constant 0 : i32
    %c0_i32_0 = arith.constant 0 : i32
    %c0_i32_1 = arith.constant 0 : i32
    %c0_i32_2 = arith.constant 0 : i32
    return %1, %c0_i32, %c0_i32_0, %c0_i32_1 : i32, i32, i32, i32
  }
  func.func @transform_2(%arg0: i32, %arg1: i32, %arg2: i32, %arg3: memref<2xi32, #tpu.memory_space<smem>>) -> (i32, i32) {
    %c0_i32 = arith.constant 0 : i32
    return %arg0, %arg1 : i32, i32
  }
}

</mosaic_0001>

<bundles_post_ra>
// kernel: tpu_custom_call.1
= control target key start
LH: loop header
LB: loop body
LE: loop exit
PB: predicated region body
PF: predicated region fallthrough
CT: control target
= control target key end

     0   :  { %s5809_s0 = inlined_call_operand.hbm [shape: s32[2], index: 0, kind: input, shape index: {}]   ;;  %s5810_s1 = inlined_call_operand.hbm [shape: bf16[128,256], index: 1, kind: input, shape index: {}]   ;;  %s5811_s2 = inlined_call_operand.hbm [shape: bf16[2,9,256,128], index: 2, kind: input, shape index: {}]   ;;  %s5812_s3 = inlined_call_operand.hbm [shape: f32[128,256], index: 3, kind: output, shape index: {}]  }
   0x1   :  { %5818 = sst [smem:[#allocation17_spill]] %s5810_s1  ;;  %s4700_s14 = scalar_lea.hbm %s5809_s0, 16 }
   0x2   :  { %p4701_p0 = scmp.ne.s32.totalorder %s5809_s0, %s4700_s14  ;;  %p4704_p1 = scmp.lt.u32.totalorder %s4700_s14, %s5809_s0 }
   0x4   :  { %p4706_p2 = pnand %p4704_p1, %p4701_p0 }
   0x6   :  { %4709 = shalt.err (!%p4706_p2)  }
   0x7   :  { %s4884_s19 = smov [#allocation4]  }
   0x8   :  { %9 = dma.hbm_to_smem %s5809_s0, 16, %s4884_s19, [#allocation3] }
   0x9   :  { %4834 = dma.done.wait [#allocation3], 16 }
   0xa   :  { %4835 = vsyncadd [#allocation3], 4294967280 }
   0xb   :  { %11 = sfence }
   0xc   :  { %12 = vsyncpa [#allocation6], 0 }
   0xd   :  { %14 = vsyncpa [#allocation6 + $0x1], 0 }
   0xe   :  { %15 = vsyncpa [#allocation9], 0 }
   0xf   :  { %17 = vsyncpa [#allocation9 + $0x1], 0 }
  0x10   :  { %18 = vsyncpa [#allocation7], 0 }
  0x11   :  { %20 = vsyncpa [#allocation7 + $0x1], 0  ;;  %s4927_s22 = smov 0   ;;  %s4929_s23 = smov 0  }
  0x12   :  { %s4931_s24 = smov 0   ;;  %s4933_s25 = smov 0  }
  0x13   :  { %s4935_s26 = smov 0   ;;  %s4937_s0 = smov 0  }
  0x14   :  { %s4939_s27 = smov 0   ;;  %s4941_s28 = smov 0  }
  0x15   :  { %s4943_s29 = smov 0  }
  0x16 LB: > { %s3386_s30 = sadd.s32 4294967295, %s4882_s29   ;;  %s41_s4 = sadd.s32 1, %s4878_s28  ;;  %s4882_s29 = sphi %s4943_s29, %s26_s29   ;;  %s4878_s28 = sphi %s4941_s28, %s5845_s28   ;;  %s4874_s27 = sphi %s4939_s27, %s5844_s27   ;;  %s4870_s0 = sphi %s4937_s0, %s5843_s0   ;;  %s4866_s26 = sphi %s4935_s26, %s5842_s26   ;;  %s4862_s25 = sphi %s4933_s25, %s5841_s25   ;;  %s4858_s24 = sphi %s4931_s24, %s5840_s24   ;;  %s4854_s23 = sphi %s4929_s23, %s5839_s23   ;;  %s4850_s22 = sphi %s4927_s22, %s5838_s22  }
  0x17   : > { %p43_p3 = scmp.ge.s32.totalorder %s41_s4, 2  ;;  %s50_s5 = sld [smem:[#allocation4 + %s4878_s28]] }
  0x18   : > { %s58_s6 = sadd.s32 1, %s4870_s0  ;;  %p65_p4 = scmp.ne.s32.totalorder %s4870_s0, %s4866_s26 }
  0x19   : > { %s5847_s4 = smov (%p43_p3, %s41_s4), 0  ;;  %p5814_p5 = scmp.eq.s32.totalorder %s4882_s29, 0 }
  0x1a   : > { %p71_p6 = scmp.ne.s32.totalorder %s4866_s26, %s4862_s25  ;;  %s52_s7 = sld [smem:[#allocation4 + %s5847_s4]] }
  0x1b   : > { %p4983_p7 = scmp.eq.s32.totalorder %s3386_s30, 0  ;;  %p4989_p8 = por %p5814_p5, %p65_p4 }
  0x1c   : > { %p5813_p11 = scmp.lt.s32.totalorder %s4882_s29, 2  ;;  %s151_s11 = sand.u32 1, %s4870_s0  }
  0x1d   : > { %s5819_s8 = scalar_select %p4983_p7, 1, 0 }
  0x1e   : > { %p4996_p10 = por %p4983_p7, %p71_p6  ;;  %s3390_s12 = sshll.u32 %s151_s11, 7 }
  0x1f   : > { %p5006_p12 = pnand %p5813_p11, %p4989_p8  ;;  %s155_s15 = scalar_lea.vmem [#allocation5], %s3390_s12 }
  0x20   : > { %s5821_s10 = scalar_select %p4996_p10, 1, 0 }
  0x21   : > { %s54_s14 = ssub.s32 %s50_s5, %s52_s7  ;;  %s167_s16 = sshll.u32 %s155_s15, 4  ;;  %s5010_s16 = int_to_ptr.vmem [resolvable:$true] %s167_s16 }
  0x22   : > { %p56_p13 = scmp.eq.s32.totalorder %s54_s14, 0  ;;  %p3394_p0 = scmp.ge.s32.totalorder %s4882_s29, 1 }
  0x23   : > { %s4413_s17 = scalar_select %p4989_p8, [#allocation4], [#allocation11] }
  0x24   : > { %s5015_s18 = scalar_select %p56_p13, %s4870_s0, %s58_s6  }
  0x25   : > { %s4414_s19 = scalar_select %p4989_p8, %s4878_s28, 0 }
  0x26   : > { %s5849_s17 = smov (!%p5813_p11, %s4413_s17), [#allocation12]  ;;  %p197_p1 = scmp.lt.s32.totalorder %s4882_s29, 3 }
  0x27   : > { %s5851_s19 = smov (!%p5813_p11, %s4414_s19), 0  ;;  %s3387_s25 = sadd.s32 4294967294, %s4882_s29  }
  0x28   : > { %s157_s20 = sld [smem:[%s5849_s17 + %s5851_s19]]  ;;  %p5026_p2 = pnand %p3394_p0, %p197_p1 }
  0x29   : > { %s83_s5 = ssub.s32 %s4878_s28, %s5847_s4  ;;  %s5825_s1 = sld [smem:[#allocation17_spill]] }
  0x2a   : > { %s5823_s21 = scalar_select %p5026_p2, 1, 0 }
  0x2b   : > { %p5033_p3 = scmp.eq.s32.totalorder %s83_s5, 0  ;;  %s86_s15 = sadd.s32 1, %s4858_s24 }
  0x2c   : > { %s5043_s17 = scalar_lea.sflag [#allocation6], %s151_s11  ;;  %p4712_p6 = pneg %p5006_p12 }
  0x2e   : > { %s3817_s7 = sshll.u32 %s157_s20, 7 }
  0x2f   : > { %s5040_s14 = scalar_lea.hbm %s5825_s1, %s3817_s7  ;;  %s4715_s7 = scalar_lea.hbm %s5825_s1, 2048 }
  0x30   : > { %s4710_s19 = scalar_lea.hbm %s5040_s14, 2048  ;;  %p4716_p0 = scmp.lt.u32.totalorder %s5040_s14, %s5825_s1 }
  0x31   : > { %p4711_p4 = scmp.ne.s32.totalorder %s5040_s14, %s4710_s19  ;;  %p4717_p1 = scmp.lt.u32.totalorder %s4715_s7, %s4710_s19 }
  0x32   : > { %p4719_p11 = scmp.lt.u32.totalorder %s4710_s19, %s5040_s14 }
  0x33   : > { %p4713_p8 = pnand %p4712_p6, %p4711_p4  ;;  %p4718_p9 = por %p4717_p1, %p4716_p0 }
  0x35   : > { %p4714_p13 = pneg %p4713_p8  ;;  %p4720_p5 = por %p4719_p11, %p4718_p9 }
  0x37   : > { %p4721_p10 = pnand %p4720_p5, %p4714_p13 }
  0x39   : > { %4724 = shalt.err (!%p4721_p10)
}
  0x3a   : > { %s4725_s11 = scalar_lea.vmem %s5010_s16, 2048  ;;  %s4885_s20 = smov [#allocation5]  }
  0x3b   : > { %p4726_p4 = scmp.ne.s32.totalorder %s5010_s16, %s4725_s11  ;;  %s4730_s5 = sshll.u32 %s4885_s20, 4  ;;  %s4731_s5 = int_to_ptr.vmem [resolvable:$false] %s4730_s5 }
  0x3c   : > { %s4732_s9 = scalar_lea.vmem %s4731_s5, 4096  ;;  %p4733_p7 = scmp.lt.s32.totalorder %s5010_s16, %s4731_s5 }
  0x3d   : > { %p4728_p8 = pnand %p4726_p4, %p4712_p6  ;;  %p4734_p0 = scmp.lt.s32.totalorder %s4732_s9, %s4725_s11 }
  0x3f   : > { %p4729_p2 = pneg %p4728_p8  ;;  %p4735_p1 = por %p4734_p0, %p4733_p7 }
  0x41   : > { %p4736_p9 = pnand %p4735_p1, %p4729_p2 }
  0x43   : > { %4739 = shalt.err (!%p4736_p9)
}
  0x44   : > { %s4886_s19 = smov 128   ;;  %s4887_s7 = smov 8  }
  0x45   : > { %4426 = dma.hbm_to_vmem [thread:$0]  (!%p5006_p12), %s5040_s14, 2048, %s5010_s16, %s5043_s17, %s4886_s19, %s4886_s19, %s4887_s7  }
  0x46   : > { %s5076_s12 = scalar_select %p5033_p3, %s4858_s24, %s86_s15  }
  0x47   : > { %p93_p5 = scmp.ne.s32.totalorder %s4858_s24, %s4854_s23  ;;  %p99_p7 = scmp.ne.s32.totalorder %s4854_s23, %s4850_s22 }
  0x48   : > { %p125_p10 = scmp.eq.s32.totalorder %s3386_s30, 1  ;;  %p131_p11 = scmp.eq.s32.totalorder %s3387_s25, 1 }
  0x49   : > { %p5826_p2 = scmp.eq.s32.totalorder %s4882_s29, 0  ;;  %p5827_p13 = scmp.ne.s32.totalorder %s5819_s8, 0 }
  0x4a   : > { %p5094_p8 = por %p125_p10, %p93_p5  ;;  %p5098_p12 = por %p131_p11, %p99_p7 }
  0x4b   : > { %p95_p6 = por %p93_p5, %p5826_p2  ;;  %p5090_p4 = por %p99_p7, %p5827_p13 }
  0x4c   : > { %s5829_s13 = scalar_select %p5094_p8, 1, 0 }
  0x4d   : > { %s5830_s16 = scalar_select %p5098_p12, 1, 0 }
  0x4e   : > { %s177_s6 = sand.u32 1, %s4858_s24   ;;  %s4411_s14 = smul.u32 18432, %s4878_s28 }
  0x4f   : > { %s4410_s30 = smul.u32 1152, %s177_s6  ;;  %p5831_p3 = scmp.lt.s32.totalorder %s4882_s29, 2 }
  0x50   : > { %s5107_s17 = scalar_lea.hbm %s5811_s2, %s4411_s14  ;;  %s5117_s9 = scalar_lea.sflag [#allocation9], %s177_s6 }
  0x51   : > { %p5111_p0 = pnand %p5831_p3, %p95_p6  ;;  %s181_s20 = scalar_lea.vmem [#allocation8], %s4410_s30 }
  0x52   : > { %s189_s5 = sshll.u32 %s181_s20, 4  ;;  %s4740_s19 = scalar_lea.hbm %s5107_s17, 18432  ;;  %s5115_s5 = int_to_ptr.vmem [resolvable:$true] %s189_s5 }
  0x53   : > { %p4741_p1 = scmp.ne.s32.totalorder %s5107_s17, %s4740_s19  ;;  %p4742_p9 = pneg %p5111_p0 }
  0x54   : > { %s4745_s15 = scalar_lea.hbm %s5811_s2, 36864  ;;  %p4746_p10 = scmp.lt.u32.totalorder %s5107_s17, %s5811_s2 }
  0x55   : > { %p4743_p5 = pnand %p4742_p9, %p4741_p1  ;;  %p4747_p11 = scmp.lt.u32.totalorder %s4745_s15, %s4740_s19 }
  0x56   : > { %p4749_p6 = scmp.lt.u32.totalorder %s4740_s19, %s5107_s17 }
  0x57   : > { %p4744_p7 = pneg %p4743_p5  ;;  %p4748_p2 = por %p4747_p11, %p4746_p10 }
  0x59   : > { %p4750_p13 = por %p4749_p6, %p4748_p2 }
  0x5b   : > { %p4751_p3 = pnand %p4750_p13, %p4744_p7 }
  0x5d   : > { %4754 = shalt.err (!%p4751_p3)
}
  0x5e   : > { %s4755_s6 = scalar_lea.vmem %s5115_s5, 18432  ;;  %s4888_s30 = smov [#allocation8]  }
  0x5f   : > { %p4756_p1 = scmp.ne.s32.totalorder %s5115_s5, %s4755_s6  ;;  %s4760_s20 = sshll.u32 %s4888_s30, 4  ;;  %s4761_s20 = int_to_ptr.vmem [resolvable:$false] %s4760_s20 }
  0x60   : > { %s4762_s1 = scalar_lea.vmem %s4761_s20, 36864  ;;  %p4763_p8 = scmp.lt.s32.totalorder %s5115_s5, %s4761_s20 }
  0x61   : > { %p4758_p5 = pnand %p4756_p1, %p4742_p9  ;;  %p4764_p10 = scmp.lt.s32.totalorder %s4762_s1, %s4755_s6 }
  0x63   : > { %p4759_p12 = pneg %p4758_p5  ;;  %p4765_p11 = por %p4764_p10, %p4763_p8 }
  0x65   : > { %p4766_p2 = pnand %p4765_p11, %p4759_p12 }
  0x67   : > { %4769 = shalt.err (!%p4766_p2)
}
  0x68   : > { %s4889_s19 = smov 64   ;;  %s4890_s7 = smov 4  }
  0x69   : > { %4429 = dma.hbm_to_vmem [thread:$0]  (!%p5111_p0), %s5107_s17, 18432, %s5115_s5, %s5117_s9, %s4889_s19, %s4889_s19, %s4890_s7  }
  0x6a   : > { %p5833_p9 = scmp.ne.s32.totalorder %s5823_s21, 0 }
  0x6b   : > { %s203_s14 = sand.u32 (!%p5833_p9), 1, %s4866_s26   ;;  %p5834_p8 = scmp.ne.s32.totalorder (!%p5833_p9), %s5821_s10, 0 }
  0x6c   : > { %201 = sbr.rel (%p5833_p9) target bundleno = 671 (0x29f), region = 28  ;;  %s3395_s15 = sshll.u32 (!%p5833_p9), %s203_s14, 7 }
  0x6d   : > { %s204_s25 = scalar_lea.sflag (!%p5833_p9), [#allocation6], %s203_s14  ;;  %s5148_s6 = scalar_lea.vmem (!%p5833_p9), [#allocation5], %s3395_s15 }
  0x73   : > { %4837 = dma.done.wait (%p5834_p8), %s204_s25, 2048  }
  0x74   : > { %4839 = vsyncadd (%p5834_p8), %s204_s25, 4294965248  ;;  %s5155_s30 = sand.u32 1, %s4854_s23  }
  0x75   : > { %s4412_s21 = smul.u32 1152, %s5155_s30  ;;  %s213_s17 = scalar_lea.sflag [#allocation9], %s5155_s30 }
  0x77   : > { %s5159_s8 = scalar_lea.vmem [#allocation8], %s4412_s21 }
  0x78   : > { %4841 = dma.done.wait (%p5090_p4), %s213_s17, 18432  }
  0x79   : > { %4843 = vsyncadd (%p5090_p4), %s213_s17, 4294948864  ;;  %v4516_v0 = vld [vmem:[%s5159_s8 + $0x40] sm:$0xff]   ;;  %v4518_v2 = vld [vmem:[%s5159_s8 + $0x48] sm:$0xff]   ;;  %s3396_s10 = sshll.u32 %s5155_s30, 7  ;;  %s3814_s5 = sshll.u32 %s4874_s27, 7 }
  0x7a   : > { %v4517_v1 = vld [vmem:[%s5159_s8] sm:$0xff]   ;;  %3818 = vmatprep.subr.bf16.mxu0 %v4516_v0  ;;  %4394 = vmatprep.subr.bf16.mxu1 %v4516_v0  ;;  %v4519_v3 = vld [vmem:[%s5159_s8 + $0x8] sm:$0xff]   ;;  %v4520_v4 = vld [vmem:[%s5159_s8 + $0x50] sm:$0xff]   ;;  %s5712_s11 = scalar_lea.vmem [#allocation10], %s3396_s10  ;;  %s5747_s19 = scalar_lea.hbm %s5812_s3, %s3814_s5 }
  0x7b   : > { %3819 = vmatpush3.bf16.msra.mxu0 %v4517_v1  ;;  %4402 = vmatpush3.bf16.msra.mxu1 %v4517_v1  ;;  %v4521_v5 = vld [vmem:[%s5159_s8 + $0x10] sm:$0xff]   ;;  %v4522_v6 = vld [vmem:[%s5159_s8 + $0x58] sm:$0xff]   ;;  %v4524_v8 = vld [vmem:[%s5159_s8 + $0x60] sm:$0xff]   ;;  %s3273_s9 = sshll.u32 %s5712_s11, 4  ;;  %s3258_s27 = scalar_lea.sflag [#allocation7], %s5155_s30  ;;  %s5749_s9 = int_to_ptr.vmem [resolvable:$true] %s3273_s9 }
  0x7c   : > { %3820 = vmatprep.subr.bf16.mxu0 %v4518_v2  ;;  %4395 = vmatprep.subr.bf16.mxu1 %v4518_v2  ;;  %v4523_v7 = vld [vmem:[%s5159_s8 + $0x18] sm:$0xff]   ;;  %v4525_v9 = vld [vmem:[%s5159_s8 + $0x20] sm:$0xff]   ;;  %v4526_v10 = vld [vmem:[%s5159_s8 + $0x68] sm:$0xff]   ;;  %s4770_s7 = scalar_lea.vmem %s5749_s9, 2048  ;;  %p5835_p12 = scmp.ne.s32.totalorder %s5829_s13, 0 }
  0x7d   : > { %v5177_v11 = vld [vmem:[%s5148_s6 + $0x4] ss:$8 sps:$4 sm:$0xff]   ;;  %v4528_v14 = vld [vmem:[%s5159_s8 + $0x70] sm:$0xff]   ;;  %v4530_v16 = vld [vmem:[%s5159_s8 + $0x78] sm:$0xff]   ;;  %p4771_p4 = scmp.ne.s32.totalorder %s5749_s9, %s4770_s7  ;;  %s4891_s14 = smov [#allocation10]  }
  0x7e   : > { %v5180_v12 = vld [vmem:[%s5148_s6 + $0x44] ss:$8 sps:$4 sm:$0xff]   ;;  %669 = vmatprep.mubr.bf16.mxu0 %v5177_v11  ;;  %v4529_v15 = vld [vmem:[%s5159_s8 + $0x30] sm:$0xff]   ;;  %v4531_v17 = vld [vmem:[%s5159_s8 + $0x38] sm:$0xff]   ;;  %s4774_s15 = sshll.u32 %s4891_s14, 4  ;;  %s4775_s15 = int_to_ptr.vmem [resolvable:$false] %s4774_s15 }
  0x7f   : > { %3821 = vmatpush3.bf16.msra.mxu0 %v4519_v3  ;;  %4403 = vmatpush3.bf16.msra.mxu1 %v4519_v3  ;;  %v4527_v13 = vld [vmem:[%s5159_s8 + $0x28] sm:$0xff]   ;;  %v4538_v20 = vld [vmem:[%s5159_s8 + $0xc0] sm:$0xff]   ;;  %v5202_v26 = vld [vmem:[%s5148_s6 + $0x14] ss:$8 sps:$4 sm:$0xff]   ;;  %p4772_p0 = pnand %p4771_p4, %p5835_p12  ;;  %s4776_s25 = scalar_lea.vmem %s4775_s15, 4096 }
  0x80   : > { %3822 = vmatprep.subr.bf16.mxu0 %v4520_v4  ;;  %4396 = vmatprep.subr.bf16.mxu1 %v4520_v4  ;;  %v5190_v18 = vld [vmem:[%s5148_s6] ss:$8 sps:$4 sm:$0xff]   ;;  %v5206_v28 = vld [vmem:[%s5148_s6 + $0x54] ss:$8 sps:$4 sm:$0xff]   ;;  %v5213_v31 = vld [vmem:[%s5148_s6 + $0x10] ss:$8 sps:$4 sm:$0xff]   ;;  %p4777_p6 = scmp.lt.s32.totalorder %s5749_s9, %s4775_s15  ;;  %p4778_p13 = scmp.lt.s32.totalorder %s4776_s25, %s4770_s7 }
  0x81   : > { %701 = vmatprep.mubr.bf16.mxu1 %v5180_v12  ;;  %v5193_v19 = vld [vmem:[%s5148_s6 + $0x40] ss:$8 sps:$4 sm:$0xff]   ;;  %v4552_v30 = vld [vmem:[%s5159_s8 + $0xd0] sm:$0xff]   ;;  %v4556_v36 = vld [vmem:[%s5159_s8 + $0xd8] sm:$0xff]   ;;  %p4773_p7 = pneg %p4772_p0 }
  0x82   : > { %v4539_v21 = vld [vmem:[%s5159_s8 + $0x140] sm:$0xff]   ;;  %v4542_v24 = vld [vmem:[%s5159_s8 + $0xc8] sm:$0xff]   ;;  %v4553_v32 = vld [vmem:[%s5159_s8 + $0x150] sm:$0xff]   ;;  %p4779_p3 = por %p4778_p13, %p4777_p6 }
  0x83   : > { %3823 = vmatpush3.bf16.msra.mxu0 %v4521_v5  ;;  %4404 = vmatpush3.bf16.msra.mxu1 %v4521_v5  ;;  %v4540_v22 = vld [vmem:[%s5159_s8 + $0x80] sm:$0xff]   ;;  %v4543_v25 = vld [vmem:[%s5159_s8 + $0x148] sm:$0xff]   ;;  %v5219_v33 = vld [vmem:[%s5148_s6 + $0x50] ss:$8 sps:$4 sm:$0xff]  }
  0x84   : > { %3824 = vmatprep.subr.bf16.mxu0 %v4522_v6  ;;  %4397 = vmatprep.subr.bf16.mxu1 %v4522_v6  ;;  %v4541_v23 = vld [vmem:[%s5159_s8 + $0x100] sm:$0xff]   ;;  %v4544_v27 = vld [vmem:[%s5159_s8 + $0x88] sm:$0xff]   ;;  %v4554_v34 = vld [vmem:[%s5159_s8 + $0x90] sm:$0xff]   ;;  %p4780_p1 = pnand %p4779_p3, %p4773_p7 }
  0x85   : > { %v4545_v29 = vld [vmem:[%s5159_s8 + $0x108] sm:$0xff]   ;;  %v4555_v35 = vld [vmem:[%s5159_s8 + $0x110] sm:$0xff]   ;;  %v4557_v37 = vld [vmem:[%s5159_s8 + $0x158] sm:$0xff]  }
  0x86   : > { %v5226_v38 = vld [vmem:[%s5148_s6 + $0x24] ss:$8 sps:$4 sm:$0xff]   ;;  %v4558_v39 = vld [vmem:[%s5159_s8 + $0x98] sm:$0xff]   ;;  %v5237_v43 = vld [vmem:[%s5148_s6 + $0x20] ss:$8 sps:$4 sm:$0xff]  }
  0x87   : > { %3825 = vmatpush3.bf16.msra.mxu0 %v4523_v7  ;;  %4405 = vmatpush3.bf16.msra.mxu1 %v4523_v7  ;;  %v5230_v40 = vld [vmem:[%s5148_s6 + $0x64] ss:$8 sps:$4 sm:$0xff]   ;;  %v4559_v41 = vld [vmem:[%s5159_s8 + $0x118] sm:$0xff]   ;;  %v5240_v44 = vld [vmem:[%s5148_s6 + $0x60] ss:$8 sps:$4 sm:$0xff]  }
  0x88   : > { %3826 = vmatprep.subr.bf16.mxu0 %v4524_v8  ;;  %4398 = vmatprep.subr.bf16.mxu1 %v4524_v8  ;;  %v4566_v42 = vld [vmem:[%s5159_s8 + $0xe0] sm:$0xff]   ;;  %v4570_v48 = vld [vmem:[%s5159_s8 + $0xe8] sm:$0xff]   ;;  %v5250_v50 = vld [vmem:[%s5148_s6 + $0x34] ss:$8 sps:$4 sm:$0xff]  }
  0x89   : > { %v4567_v45 = vld [vmem:[%s5159_s8 + $0x160] sm:$0xff]   ;;  %v4571_v49 = vld [vmem:[%s5159_s8 + $0x168] sm:$0xff]   ;;  %v5253_v51 = vld [vmem:[%s5148_s6 + $0x74] ss:$8 sps:$4 sm:$0xff]  }
  0x8a   : > { %v4568_v46 = vld [vmem:[%s5159_s8 + $0xa0] sm:$0xff]   ;;  %v4572_v52 = vld [vmem:[%s5159_s8 + $0xa8] sm:$0xff]   ;;  %v4580_v54 = vld [vmem:[%s5159_s8 + $0xf0] sm:$0xff]  }
  0x8b   : > { %3827 = vmatpush3.bf16.msra.mxu0 %v4525_v9  ;;  %4406 = vmatpush3.bf16.msra.mxu1 %v4525_v9  ;;  %v4569_v47 = vld [vmem:[%s5159_s8 + $0x120] sm:$0xff]   ;;  %v4573_v53 = vld [vmem:[%s5159_s8 + $0x128] sm:$0xff]   ;;  %v5261_v55 = vld [vmem:[%s5148_s6 + $0x30] ss:$8 sps:$4 sm:$0xff]  }
  0x8c   : > { %3828 = vmatprep.subr.bf16.mxu0 %v4526_v10  ;;  %4399 = vmatprep.subr.bf16.mxu1 %v4526_v10  ;;  %v5264_v56 = vld [vmem:[%s5148_s6 + $0x70] ss:$8 sps:$4 sm:$0xff]   ;;  %v4588_v0 = vld [vmem:[%s5159_s8 + $0x1c0] sm:$0xff]   ;;  %v4592_v4 = vld [vmem:[%s5159_s8 + $0x1c8] sm:$0xff]  }
  0x8d   : > { %v4581_v57 = vld [vmem:[%s5159_s8 + $0x170] sm:$0xff]   ;;  %v4584_v60 = vld [vmem:[%s5159_s8 + $0xf8] sm:$0xff]   ;;  %v4590_v1 = vld [vmem:[%s5159_s8 + $0x240] sm:$0xff]  }
  0x8e   : > { %v4582_v58 = vld [vmem:[%s5159_s8 + $0xb0] sm:$0xff]   ;;  %v4585_v61 = vld [vmem:[%s5159_s8 + $0x178] sm:$0xff]   ;;  %v4589_v2 = vld [vmem:[%s5159_s8 + $0x180] sm:$0xff]  }
  0x8f   : > { %3829 = vmatpush3.bf16.msra.mxu0 %v4527_v13  ;;  %4407 = vmatpush3.bf16.msra.mxu1 %v4527_v13  ;;  %v4583_v59 = vld [vmem:[%s5159_s8 + $0x130] sm:$0xff]   ;;  %v4586_v62 = vld [vmem:[%s5159_s8 + $0xb8] sm:$0xff]   ;;  %v4591_v3 = vld [vmem:[%s5159_s8 + $0x200] sm:$0xff]  }
  0x90   : > { %3830 = vmatprep.subr.bf16.mxu0 %v4528_v14  ;;  %4400 = vmatprep.subr.bf16.mxu1 %v4528_v14  ;;  %v4587_v63 = vld [vmem:[%s5159_s8 + $0x138] sm:$0xff]   ;;  %v4594_v5 = vld [vmem:[%s5159_s8 + $0x248] sm:$0xff]   ;;  %v4596_v8 = vld [vmem:[%s5159_s8 + $0x1d0] sm:$0xff]  }
  0x91   : > { %v4593_v6 = vld [vmem:[%s5159_s8 + $0x188] sm:$0xff]   ;;  %v4598_v9 = vld [vmem:[%s5159_s8 + $0x250] sm:$0xff]   ;;  %v4600_v14 = vld [vmem:[%s5159_s8 + $0x1d8] sm:$0xff]  }
  0x92   : > { %v4595_v7 = vld [vmem:[%s5159_s8 + $0x208] sm:$0xff]   ;;  %v4597_v10 = vld [vmem:[%s5159_s8 + $0x190] sm:$0xff]  }
  0x93   : > { %3831 = vmatpush3.bf16.msra.mxu0 %v4529_v15  ;;  %4408 = vmatpush3.bf16.msra.mxu1 %v4529_v15  ;;  %v4599_v13 = vld [vmem:[%s5159_s8 + $0x210] sm:$0xff]   ;;  %v4602_v15 = vld [vmem:[%s5159_s8 + $0x258] sm:$0xff]  }
  0x94   : > { %3832 = vmatprep.subr.bf16.mxu0 %v4530_v16  ;;  %4401 = vmatprep.subr.bf16.mxu1 %v4530_v16  ;;  %v4601_v16 = vld [vmem:[%s5159_s8 + $0x198] sm:$0xff]  }
  0x97   : > { %3833 = vmatpush3.bf16.msra.mxu0 %v4531_v17  ;;  %4409 = vmatpush3.bf16.msra.mxu1 %v4531_v17  ;;  %v4603_v17 = vld [vmem:[%s5159_s8 + $0x218] sm:$0xff]  }
  0x98   : > { %3882 = vmatprep.subr.bf16.mxu1 %v4538_v20  ;;  %3946 = vmatprep.subr.bf16.mxu0 %v4539_v21  ;;  %v4604_v20 = vld [vmem:[%s5159_s8 + $0x1e0] sm:$0xff]  }
  0x99   : > { %v4606_v21 = vld [vmem:[%s5159_s8 + $0x260] sm:$0xff]  }
  0x9a   : > { %670 = vmatmul.mubr.bf16.vlgmr.msra.gmra.mrb[0].mxu0 %v5190_v18  ;;  %702 = vmatmul.mubr.bf16.vlgmr.msra.gmra.mrb[0].mxu1 %v5193_v19 }
  0x9b   : > { %3883 = vmatpush3.bf16.msra.mxu1 %v4540_v22  ;;  %3947 = vmatpush3.bf16.msra.mxu0 %v4541_v23  ;;  %v4605_v22 = vld [vmem:[%s5159_s8 + $0x1a0] sm:$0xff]  }
  0x9c   : > { %3884 = vmatprep.subr.bf16.mxu1 %v4542_v24  ;;  %3948 = vmatprep.subr.bf16.mxu0 %v4543_v25  ;;  %v4607_v23 = vld [vmem:[%s5159_s8 + $0x220] sm:$0xff]   ;;  %v4608_v24 = vld [vmem:[%s5159_s8 + $0x1e8] sm:$0xff]  }
  0x9d   : > { %677 = vmatprep.mubr.bf16.mxu0 %v5202_v26  ;;  %709 = vmatprep.mubr.bf16.mxu1 %v5206_v28  ;;  %v4610_v25 = vld [vmem:[%s5159_s8 + $0x268] sm:$0xff]  }
  0x9f   : > { %3885 = vmatpush3.bf16.msra.mxu1 %v4544_v27  ;;  %3949 = vmatpush3.bf16.msra.mxu0 %v4545_v29  ;;  %v4609_v27 = vld [vmem:[%s5159_s8 + $0x1a8] sm:$0xff]  }
  0xa0   : > { %3886 = vmatprep.subr.bf16.mxu1 %v4552_v30  ;;  %3950 = vmatprep.subr.bf16.mxu0 %v4553_v32  ;;  %v4611_v29 = vld [vmem:[%s5159_s8 + $0x228] sm:$0xff]   ;;  %v4612_v30 = vld [vmem:[%s5159_s8 + $0x1f0] sm:$0xff]  }
  0xa1   : > { %v4614_v32 = vld [vmem:[%s5159_s8 + $0x270] sm:$0xff]  }
  0xa2   : > { %678 = vmatmul.mubr.bf16.gmra.mrb[4].mxu0 %v5213_v31  ;;  %710 = vmatmul.mubr.bf16.gmra.mrb[4].mxu1 %v5219_v33 }
  0xa3   : > { %3887 = vmatpush3.bf16.msra.mxu1 %v4554_v34  ;;  %3951 = vmatpush3.bf16.msra.mxu0 %v4555_v35  ;;  %v4613_v34 = vld [vmem:[%s5159_s8 + $0x1b0] sm:$0xff]  }
  0xa4   : > { %3888 = vmatprep.subr.bf16.mxu1 %v4556_v36  ;;  %3952 = vmatprep.subr.bf16.mxu0 %v4557_v37  ;;  %v4615_v35 = vld [vmem:[%s5159_s8 + $0x230] sm:$0xff]   ;;  %v4616_v36 = vld [vmem:[%s5159_s8 + $0x1f8] sm:$0xff]  }
  0xa5   : > { %685 = vmatprep.mubr.bf16.mxu0 %v5226_v38  ;;  %717 = vmatprep.mubr.bf16.mxu1 %v5230_v40  ;;  %v4618_v37 = vld [vmem:[%s5159_s8 + $0x278] sm:$0xff]  }
  0xa7   : > { %3889 = vmatpush3.bf16.msra.mxu1 %v4558_v39  ;;  %3953 = vmatpush3.bf16.msra.mxu0 %v4559_v41  ;;  %v4617_v39 = vld [vmem:[%s5159_s8 + $0x1b8] sm:$0xff]  }
  0xa8   : > { %3890 = vmatprep.subr.bf16.mxu1 %v4566_v42  ;;  %3954 = vmatprep.subr.bf16.mxu0 %v4567_v45  ;;  %v4619_v41 = vld [vmem:[%s5159_s8 + $0x238] sm:$0xff]   ;;  %v4620_v42 = vld [vmem:[%s5159_s8 + $0x2c0] sm:$0xff]  }
  0xa9   : > { %v4622_v45 = vld [vmem:[%s5159_s8 + $0x340] sm:$0xff]  }
  0xaa   : > { %686 = vmatmul.mubr.bf16.gmra.mrb[8].mxu0 %v5237_v43  ;;  %718 = vmatmul.mubr.bf16.gmra.mrb[8].mxu1 %v5240_v44 }
  0xab   : > { %3891 = vmatpush3.bf16.msra.mxu1 %v4568_v46  ;;  %3955 = vmatpush3.bf16.msra.mxu0 %v4569_v47  ;;  %v4624_v46 = vld [vmem:[%s5159_s8 + $0x2c8] sm:$0xff]  }
  0xac   : > { %3892 = vmatprep.subr.bf16.mxu1 %v4570_v48  ;;  %3956 = vmatprep.subr.bf16.mxu0 %v4571_v49  ;;  %v4625_v47 = vld [vmem:[%s5159_s8 + $0x288] sm:$0xff]  }
  0xad   : > { %693 = vmatprep.mubr.bf16.mxu0 %v5250_v50  ;;  %725 = vmatprep.mubr.bf16.mxu1 %v5253_v51  ;;  %v4626_v48 = vld [vmem:[%s5159_s8 + $0x348] sm:$0xff]  }
  0xae   : > { %v4627_v49 = vld [vmem:[%s5159_s8 + $0x308] sm:$0xff]  }
  0xaf   : > { %3893 = vmatpush3.bf16.msra.mxu1 %v4572_v52  ;;  %3957 = vmatpush3.bf16.msra.mxu0 %v4573_v53  ;;  %v4628_v52 = vld [vmem:[%s5159_s8 + $0x2d0] sm:$0xff]  }
  0xb0   : > { %3894 = vmatprep.subr.bf16.mxu1 %v4580_v54  ;;  %3958 = vmatprep.subr.bf16.mxu0 %v4581_v57  ;;  %v4629_v53 = vld [vmem:[%s5159_s8 + $0x290] sm:$0xff]   ;;  %v4632_v54 = vld [vmem:[%s5159_s8 + $0x2d8] sm:$0xff]  }
  0xb1   : > { %v4634_v57 = vld [vmem:[%s5159_s8 + $0x358] sm:$0xff]  }
  0xb2   : > { %694 = vmatmul.mubr.bf16.gmra.mrb[12].mxu0 %v5261_v55  ;;  %726 = vmatmul.mubr.bf16.gmra.mrb[12].mxu1 %v5264_v56 }
  0xb3   : > { %3895 = vmatpush3.bf16.msra.mxu1 %v4582_v58  ;;  %3959 = vmatpush3.bf16.msra.mxu0 %v4583_v59  ;;  %v4635_v58 = vld [vmem:[%s5159_s8 + $0x318] sm:$0xff]   ;;  %v4636_v59 = vld [vmem:[%s5159_s8 + $0x2e0] sm:$0xff]  }
  0xb4   : > { %3896 = vmatprep.subr.bf16.mxu1 %v4584_v60  ;;  %3960 = vmatprep.subr.bf16.mxu0 %v4585_v61  ;;  %v4638_v60 = vld [vmem:[%s5159_s8 + $0x360] sm:$0xff]  }
  0xb5   : > { %944 = vmatprep.mubr.bf16.mxu1 %v5177_v11  ;;  %1219 = vmatprep.mubr.bf16.mxu0 %v5177_v11  ;;  %v4637_v61 = vld [vmem:[%s5159_s8 + $0x2a0] sm:$0xff]  }
  0xb7   : > { %3897 = vmatpush3.bf16.msra.mxu1 %v4586_v62  ;;  %3961 = vmatpush3.bf16.msra.mxu0 %v4587_v63  ;;  %v4639_v62 = vld [vmem:[%s5159_s8 + $0x320] sm:$0xff]   ;;  %v4642_v63 = vld [vmem:[%s5159_s8 + $0x368] sm:$0xff]  }
  0xb8   : > { %4010 = vmatprep.subr.bf16.mxu1 %v4588_v0  ;;  %4074 = vmatprep.subr.bf16.mxu0 %v4590_v1  ;;  %v4641_v0 = vld [vmem:[%s5159_s8 + $0x2a8] sm:$0xff]  }
  0xb9   : > { %v4643_v1 = vld [vmem:[%s5159_s8 + $0x328] sm:$0xff]  }
  0xba   : > { %945 = vmatmul.mubr.bf16.vlgmr.msra.gmra.mrb[16].mxu1 %v5190_v18  ;;  %1220 = vmatmul.mubr.bf16.vlgmr.msra.gmra.mrb[16].mxu0 %v5190_v18 }
  0xbb   : > { %4011 = vmatpush3.bf16.msra.mxu1 %v4589_v2  ;;  %4075 = vmatpush3.bf16.msra.mxu0 %v4591_v3  ;;  %v4644_v2 = vld [vmem:[%s5159_s8 + $0x2f0] sm:$0xff]  }
  0xbc   : > { %952 = vmatprep.mubr.bf16.mxu1 %v5202_v26  ;;  %1227 = vmatprep.mubr.bf16.mxu0 %v5202_v26  ;;  %v4646_v3 = vld [vmem:[%s5159_s8 + $0x370] sm:$0xff]  }
  0xbd   : > { %4012 = vmatprep.subr.bf16.mxu1 %v4592_v4  ;;  %4076 = vmatprep.subr.bf16.mxu0 %v4594_v5  ;;  %v4645_v4 = vld [vmem:[%s5159_s8 + $0x2b0] sm:$0xff]  }
  0xbe   : > { %v4647_v5 = vld [vmem:[%s5159_s8 + $0x330] sm:$0xff]  }
  0xbf   : > { %4013 = vmatpush3.bf16.msra.mxu1 %v4593_v6  ;;  %4077 = vmatpush3.bf16.msra.mxu0 %v4595_v7  ;;  %v4648_v6 = vld [vmem:[%s5159_s8 + $0x2f8] sm:$0xff]  }
  0xc0   : > { %4014 = vmatprep.subr.bf16.mxu1 %v4596_v8  ;;  %4078 = vmatprep.subr.bf16.mxu0 %v4598_v9  ;;  %v4650_v7 = vld [vmem:[%s5159_s8 + $0x378] sm:$0xff]   ;;  %v5388_v8 = vld [vmem:[%s5148_s6 + $0x44] ss:$8 sps:$4 sm:$0xff]  }
  0xc1   : > { %v4649_v9 = vld [vmem:[%s5159_s8 + $0x2b8] sm:$0xff]  }
  0xc2   : > { %953 = vmatmul.mubr.bf16.gmra.mrb[20].mxu1 %v5213_v31  ;;  %1228 = vmatmul.mubr.bf16.gmra.mrb[20].mxu0 %v5213_v31 }
  0xc3   : > { %960 = vmatprep.mubr.bf16.mxu1 %v5226_v38  ;;  %1235 = vmatprep.mubr.bf16.mxu0 %v5226_v38 }
  0xc4   : > { %4015 = vmatpush3.bf16.msra.mxu1 %v4597_v10  ;;  %4079 = vmatpush3.bf16.msra.mxu0 %v4599_v13  ;;  %v4651_v10 = vld [vmem:[%s5159_s8 + $0x338] sm:$0xff]   ;;  %v4652_v13 = vld [vmem:[%s5159_s8 + $0x3c0] sm:$0xff]  }
  0xc5   : > { %4016 = vmatprep.subr.bf16.mxu1 %v4600_v14  ;;  %4080 = vmatprep.subr.bf16.mxu0 %v4602_v15  ;;  %v4654_v14 = vld [vmem:[%s5159_s8 + $0x440] sm:$0xff]  }
  0xc6   : > { %v5397_v15 = vld [vmem:[%s5148_s6 + $0x40] ss:$8 sps:$4 sm:$0xff]  }
  0xc8   : > { %4017 = vmatpush3.bf16.msra.mxu1 %v4601_v16  ;;  %4081 = vmatpush3.bf16.msra.mxu0 %v4603_v17  ;;  %v4658_v16 = vld [vmem:[%s5159_s8 + $0x448] sm:$0xff]  }
  0xc9   : > { %4018 = vmatprep.subr.bf16.mxu1 %v4604_v20  ;;  %4082 = vmatprep.subr.bf16.mxu0 %v4606_v21  ;;  %v5423_v17 = vld [vmem:[%s5148_s6] ss:$8 sps:$4 sm:$0xff]   ;;  %v5430_v20 = vld [vmem:[%s5148_s6 + $0x14] ss:$8 sps:$4 sm:$0xff]  }
  0xca   : > { %961 = vmatmul.mubr.bf16.gmra.mrb[24].mxu1 %v5237_v43  ;;  %1236 = vmatmul.mubr.bf16.gmra.mrb[24].mxu0 %v5237_v43  ;;  %v4660_v21 = vld [vmem:[%s5159_s8 + $0x3d0] sm:$0xff]  }
  0xcb   : > { %968 = vmatprep.mubr.bf16.mxu1 %v5250_v50  ;;  %1243 = vmatprep.mubr.bf16.mxu0 %v5250_v50 }
  0xcc   : > { %4019 = vmatpush3.bf16.msra.mxu1 %v4605_v22  ;;  %4083 = vmatpush3.bf16.msra.mxu0 %v4607_v23  ;;  %v4662_v22 = vld [vmem:[%s5159_s8 + $0x450] sm:$0xff]  }
  0xcd   : > { %4020 = vmatprep.subr.bf16.mxu1 %v4608_v24  ;;  %4084 = vmatprep.subr.bf16.mxu0 %v4610_v25  ;;  %v4661_v23 = vld [vmem:[%s5159_s8 + $0x390] sm:$0xff]   ;;  %v4664_v25 = vld [vmem:[%s5159_s8 + $0x3d8] sm:$0xff]  }
  0xce   : > { %v4663_v24 = vld [vmem:[%s5159_s8 + $0x410] sm:$0xff]  }
  0xd0   : > { %4021 = vmatpush3.bf16.msra.mxu1 %v4609_v27  ;;  %4085 = vmatpush3.bf16.msra.mxu0 %v4611_v29  ;;  %v4666_v27 = vld [vmem:[%s5159_s8 + $0x458] sm:$0xff]  }
  0xd1   : > { %4022 = vmatprep.subr.bf16.mxu1 %v4612_v30  ;;  %4086 = vmatprep.subr.bf16.mxu0 %v4614_v32  ;;  %v5441_v29 = vld [vmem:[%s5148_s6 + $0x10] ss:$8 sps:$4 sm:$0xff]  }
  0xd2   : > { %969 = vmatmul.mubr.bf16.gmra.mrb[28].mxu1 %v5261_v55  ;;  %1244 = vmatmul.mubr.bf16.gmra.mrb[28].mxu0 %v5261_v55  ;;  %v4665_v30 = vld [vmem:[%s5159_s8 + $0x398] sm:$0xff]  }
  0xd3   : > { %976 = vmatprep.mubr.bf16.mxu1 %v5180_v12  ;;  %1251 = vmatprep.mubr.bf16.mxu0 %v5180_v12  ;;  %v4621_v12 = vld [vmem:[%s5159_s8 + $0x280] sm:$0xff]   ;;  %v4667_v32 = vld [vmem:[%s5159_s8 + $0x418] sm:$0xff]  }
  0xd4   : > { %4023 = vmatpush3.bf16.msra.mxu1 %v4613_v34  ;;  %4087 = vmatpush3.bf16.msra.mxu0 %v4615_v35  ;;  %v4668_v34 = vld [vmem:[%s5159_s8 + $0x3e0] sm:$0xff]  }
  0xd5   : > { %4024 = vmatprep.subr.bf16.mxu1 %v4616_v36  ;;  %4088 = vmatprep.subr.bf16.mxu0 %v4618_v37  ;;  %v4670_v35 = vld [vmem:[%s5159_s8 + $0x460] sm:$0xff]  }
  0xd6   : > { %v4669_v36 = vld [vmem:[%s5159_s8 + $0x3a0] sm:$0xff]  }
  0xd7   : > { %v4671_v37 = vld [vmem:[%s5159_s8 + $0x420] sm:$0xff]  }
  0xd8   : > { %4025 = vmatpush3.bf16.msra.mxu1 %v4617_v39  ;;  %4089 = vmatpush3.bf16.msra.mxu0 %v4619_v41  ;;  %v4674_v39 = vld [vmem:[%s5159_s8 + $0x468] sm:$0xff]  }
  0xd9   : > { %4138 = vmatprep.subr.bf16.mxu1 %v4620_v42  ;;  %4202 = vmatprep.subr.bf16.mxu0 %v4622_v45  ;;  %v4673_v41 = vld [vmem:[%s5159_s8 + $0x3a8] sm:$0xff]   ;;  %v4676_v45 = vld [vmem:[%s5159_s8 + $0x3f0] sm:$0xff]  }
  0xda   : > { %977 = vmatmul.mubr.bf16.gmra.mrb[32].mxu1 %v5193_v19  ;;  %1252 = vmatmul.mubr.bf16.gmra.mrb[32].mxu0 %v5193_v19  ;;  %v4623_v19 = vld [vmem:[%s5159_s8 + $0x300] sm:$0xff]   ;;  %v4675_v42 = vld [vmem:[%s5159_s8 + $0x428] sm:$0xff]  }
  0xdb   : > { %984 = vmatprep.mubr.bf16.mxu1 %v5206_v28  ;;  %1259 = vmatprep.mubr.bf16.mxu0 %v5206_v28 }
  0xe2   : > { %985 = vmatmul.mubr.bf16.gmra.mrb[36].mxu1 %v5219_v33  ;;  %1260 = vmatmul.mubr.bf16.gmra.mrb[36].mxu0 %v5219_v33 }
  0xe3   : > { %992 = vmatprep.mubr.bf16.mxu1 %v5230_v40  ;;  %1267 = vmatprep.mubr.bf16.mxu0 %v5230_v40 }
  0xea   : > { %993 = vmatmul.mubr.bf16.gmra.mrb[40].mxu1 %v5240_v44  ;;  %1268 = vmatmul.mubr.bf16.gmra.mrb[40].mxu0 %v5240_v44 }
  0xeb   : > { %1000 = vmatprep.mubr.bf16.mxu1 %v5253_v51  ;;  %1275 = vmatprep.mubr.bf16.mxu0 %v5253_v51 }
  0xf2   : > { %1001 = vmatmul.mubr.bf16.gmra.mrb[44].mxu1 %v5264_v56  ;;  %1276 = vmatmul.mubr.bf16.gmra.mrb[44].mxu0 %v5264_v56 }
  0xf3   : > { %1494 = vmatprep.mubr.bf16.mxu1 %v5177_v11  ;;  %1769 = vmatprep.mubr.bf16.mxu0 %v5177_v11  ;;  %v4630_v11 = vld [vmem:[%s5159_s8 + $0x350] sm:$0xff]  }
  0xfa   : > { %1495 = vmatmul.mubr.bf16.vlgmr.msra.gmra.mrb[48].mxu1 %v5190_v18  ;;  %1770 = vmatmul.mubr.bf16.vlgmr.msra.gmra.mrb[48].mxu0 %v5190_v18  ;;  %v4631_v18 = vld [vmem:[%s5159_s8 + $0x310] sm:$0xff]  }
  0xfb   : > { %4139 = vmatpush3.bf16.msra.mxu1 %v4621_v12  ;;  %4203 = vmatpush3.bf16.msra.mxu0 %v4623_v19  ;;  %v4678_v12 = vld [vmem:[%s5159_s8 + $0x470] sm:$0xff]  }
  0xfc   : > { %1502 = vmatprep.mubr.bf16.mxu1 %v5202_v26  ;;  %1777 = vmatprep.mubr.bf16.mxu0 %v5202_v26  ;;  %v4633_v26 = vld [vmem:[%s5159_s8 + $0x298] sm:$0xff]   ;;  %v4677_v19 = vld [vmem:[%s5159_s8 + $0x3b0] sm:$0xff]  }
  0xfd   : > { %4140 = vmatprep.subr.bf16.mxu1 %v4624_v46  ;;  %4204 = vmatprep.subr.bf16.mxu0 %v4626_v48  ;;  %v4680_v46 = vld [vmem:[%s5159_s8 + $0x3f8] sm:$0xff]  }
  0xfe   : > { %v4683_v48 = vld [vmem:[%s5159_s8 + $0x438] sm:$0xff]  }
  0xff   : > { %4141 = vmatpush3.bf16.msra.mxu1 %v4625_v47  ;;  %4205 = vmatpush3.bf16.msra.mxu0 %v4627_v49  ;;  %v4681_v47 = vld [vmem:[%s5159_s8 + $0x3b8] sm:$0xff]  }
 0x100   : > { %4142 = vmatprep.subr.bf16.mxu1 %v4628_v52  ;;  %4206 = vmatprep.subr.bf16.mxu0 %v4630_v11  ;;  %v5481_v49 = vld [vmem:[%s5148_s6 + $0x50] ss:$8 sps:$4 sm:$0xff]   ;;  %v5486_v52 = vld [vmem:[%s5148_s6 + $0x64] ss:$8 sps:$4 sm:$0xff]   ;;  %v5491_v11 = vld [vmem:[%s5148_s6 + $0x60] ss:$8 sps:$4 sm:$0xff]  }
 0x102   : > { %1503 = vmatmul.mubr.bf16.gmra.mrb[52].mxu1 %v5213_v31  ;;  %1778 = vmatmul.mubr.bf16.gmra.mrb[52].mxu0 %v5213_v31  ;;  %v4640_v31 = vld [vmem:[%s5159_s8 + $0x2e8] sm:$0xff]  }
 0x103   : > { %1510 = vmatprep.mubr.bf16.mxu1 %v5226_v38  ;;  %1785 = vmatprep.mubr.bf16.mxu0 %v5226_v38 }
 0x104   : > { %4143 = vmatpush3.bf16.msra.mxu1 %v4629_v53  ;;  %4207 = vmatpush3.bf16.msra.mxu0 %v4631_v18  ;;  %v5496_v53 = vld [vmem:[%s5148_s6 + $0x74] ss:$8 sps:$4 sm:$0xff]  }
 0x105   : > { %4144 = vmatprep.subr.bf16.mxu1 %v4632_v54  ;;  %4208 = vmatprep.subr.bf16.mxu0 %v4634_v57 }
 0x108   : > { %4145 = vmatpush3.bf16.msra.mxu1 %v4633_v26  ;;  %4209 = vmatpush3.bf16.msra.mxu0 %v4635_v58 }
 0x109   : > { %4146 = vmatprep.subr.bf16.mxu1 %v4636_v59  ;;  %4210 = vmatprep.subr.bf16.mxu0 %v4638_v60 }
 0x10a   : > { %1511 = vmatmul.mubr.bf16.gmra.mrb[56].mxu1 %v5237_v43  ;;  %1786 = vmatmul.mubr.bf16.gmra.mrb[56].mxu0 %v5237_v43 }
 0x10b   : > { %1518 = vmatprep.mubr.bf16.mxu1 %v5250_v50  ;;  %1793 = vmatprep.mubr.bf16.mxu0 %v5250_v50 }
 0x10c   : > { %4147 = vmatpush3.bf16.msra.mxu1 %v4637_v61  ;;  %4211 = vmatpush3.bf16.msra.mxu0 %v4639_v62 }
 0x10d   : > { %4148 = vmatprep.subr.bf16.mxu1 %v4640_v31  ;;  %4212 = vmatprep.subr.bf16.mxu0 %v4642_v63 }
 0x110   : > { %4149 = vmatpush3.bf16.msra.mxu1 %v4641_v0  ;;  %4213 = vmatpush3.bf16.msra.mxu0 %v4643_v1  ;;  %v5509_v1 = vld [vmem:[%s5148_s6 + $0x70] ss:$8 sps:$4 sm:$0xff]  }
 0x111   : > { %4150 = vmatprep.subr.bf16.mxu1 %v4644_v2  ;;  %4214 = vmatprep.subr.bf16.mxu0 %v4646_v3 }
 0x112   : > { %1519 = vmatmul.mubr.bf16.gmra.mrb[60].mxu1 %v5261_v55  ;;  %1794 = vmatmul.mubr.bf16.gmra.mrb[60].mxu0 %v5261_v55 }
 0x113   : > { %1526 = vmatprep.mubr.bf16.mxu1 %v5388_v8  ;;  %1801 = vmatprep.mubr.bf16.mxu0 %v5388_v8 }
 0x114   : > { %4151 = vmatpush3.bf16.msra.mxu1 %v4645_v4  ;;  %4215 = vmatpush3.bf16.msra.mxu0 %v4647_v5 }
 0x115   : > { %4152 = vmatprep.subr.bf16.mxu1 %v4648_v6  ;;  %4216 = vmatprep.subr.bf16.mxu0 %v4650_v7 }
 0x118   : > { %4153 = vmatpush3.bf16.msra.mxu1 %v4649_v9  ;;  %4217 = vmatpush3.bf16.msra.mxu0 %v4651_v10 }
 0x119   : > { %4266 = vmatprep.subr.bf16.mxu1 %v4652_v13  ;;  %4330 = vmatprep.subr.bf16.mxu0 %v4654_v14 }
 0x11a   : > { %1527 = vmatmul.mubr.bf16.gmra.mrb[64].mxu1 %v5397_v15  ;;  %1802 = vmatmul.mubr.bf16.gmra.mrb[64].mxu0 %v5397_v15 }
 0x11b   : > { %1534 = vmatprep.mubr.bf16.mxu1 %v5206_v28  ;;  %1809 = vmatprep.mubr.bf16.mxu0 %v5206_v28  ;;  %v5414_v28 = vld [vmem:[%s5148_s6 + $0x4] ss:$8 sps:$4 sm:$0xff]  }
 0x122   : > { %1535 = vmatmul.mubr.bf16.gmra.mrb[68].mxu1 %v5219_v33  ;;  %1810 = vmatmul.mubr.bf16.gmra.mrb[68].mxu0 %v5219_v33  ;;  %v4653_v33 = vld [vmem:[%s5159_s8 + $0x380] sm:$0xff]  }
 0x123   : > { %1542 = vmatprep.mubr.bf16.mxu1 %v5230_v40  ;;  %1817 = vmatprep.mubr.bf16.mxu0 %v5230_v40  ;;  %v4655_v40 = vld [vmem:[%s5159_s8 + $0x400] sm:$0xff]  }
 0x12a   : > { %1543 = vmatmul.mubr.bf16.gmra.mrb[72].mxu1 %v5240_v44  ;;  %1818 = vmatmul.mubr.bf16.gmra.mrb[72].mxu0 %v5240_v44  ;;  %v4656_v44 = vld [vmem:[%s5159_s8 + $0x3c8] sm:$0xff]  }
 0x12b   : > { %1550 = vmatprep.mubr.bf16.mxu1 %v5253_v51  ;;  %1825 = vmatprep.mubr.bf16.mxu0 %v5253_v51  ;;  %v4657_v51 = vld [vmem:[%s5159_s8 + $0x388] sm:$0xff]  }
 0x132   : > { %1551 = vmatmul.mubr.bf16.gmra.mrb[76].mxu1 %v5264_v56  ;;  %1826 = vmatmul.mubr.bf16.gmra.mrb[76].mxu0 %v5264_v56  ;;  %v4659_v56 = vld [vmem:[%s5159_s8 + $0x408] sm:$0xff]  }
 0x133   : > { %2044 = vmatprep.mubr.bf16.mxu1 %v5414_v28  ;;  %2319 = vmatprep.mubr.bf16.mxu0 %v5414_v28 }
 0x13a   : > { %2045 = vmatmul.mubr.bf16.vlgmr.msra.gmra.mrb[80].mxu1 %v5423_v17  ;;  %2320 = vmatmul.mubr.bf16.vlgmr.msra.gmra.mrb[80].mxu0 %v5423_v17 }
 0x13b   : > { %4267 = vmatpush3.bf16.msra.mxu1 %v4653_v33  ;;  %4331 = vmatpush3.bf16.msra.mxu0 %v4655_v40 }
 0x13c   : > { %2052 = vmatprep.mubr.bf16.mxu1 %v5430_v20  ;;  %2327 = vmatprep.mubr.bf16.mxu0 %v5430_v20 }
 0x13d   : > { %4268 = vmatprep.subr.bf16.mxu1 %v4656_v44  ;;  %4332 = vmatprep.subr.bf16.mxu0 %v4658_v16 }
 0x13f   : > { %4269 = vmatpush3.bf16.msra.mxu1 %v4657_v51  ;;  %4333 = vmatpush3.bf16.msra.mxu0 %v4659_v56 }
 0x140   : > { %4270 = vmatprep.subr.bf16.mxu1 %v4660_v21  ;;  %4334 = vmatprep.subr.bf16.mxu0 %v4662_v22 }
 0x142   : > { %2053 = vmatmul.mubr.bf16.gmra.mrb[84].mxu1 %v5441_v29  ;;  %2328 = vmatmul.mubr.bf16.gmra.mrb[84].mxu0 %v5441_v29 }
 0x143   : > { %2060 = vmatprep.mubr.bf16.mxu1 %v5226_v38  ;;  %2335 = vmatprep.mubr.bf16.mxu0 %v5226_v38  ;;  %v4672_v38 = vld [vmem:[%s5159_s8 + $0x3e8] sm:$0xff]  }
 0x144   : > { %4271 = vmatpush3.bf16.msra.mxu1 %v4661_v23  ;;  %4335 = vmatpush3.bf16.msra.mxu0 %v4663_v24 }
 0x145   : > { %4272 = vmatprep.subr.bf16.mxu1 %v4664_v25  ;;  %4336 = vmatprep.subr.bf16.mxu0 %v4666_v27 }
 0x148   : > { %4273 = vmatpush3.bf16.msra.mxu1 %v4665_v30  ;;  %4337 = vmatpush3.bf16.msra.mxu0 %v4667_v32 }
 0x149   : > { %4274 = vmatprep.subr.bf16.mxu1 %v4668_v34  ;;  %4338 = vmatprep.subr.bf16.mxu0 %v4670_v35 }
 0x14a   : > { %2061 = vmatmul.mubr.bf16.gmra.mrb[88].mxu1 %v5237_v43  ;;  %2336 = vmatmul.mubr.bf16.gmra.mrb[88].mxu0 %v5237_v43  ;;  %v4679_v43 = vld [vmem:[%s5159_s8 + $0x430] sm:$0xff]  }
 0x14b   : > { %2068 = vmatprep.mubr.bf16.mxu1 %v5250_v50  ;;  %2343 = vmatprep.mubr.bf16.mxu0 %v5250_v50  ;;  %v4682_v50 = vld [vmem:[%s5159_s8 + $0x478] sm:$0xff]  }
 0x14c   : > { %4275 = vmatpush3.bf16.msra.mxu1 %v4669_v36  ;;  %4339 = vmatpush3.bf16.msra.mxu0 %v4671_v37 }
 0x14d   : > { %4276 = vmatprep.subr.bf16.mxu1 %v4672_v38  ;;  %4340 = vmatprep.subr.bf16.mxu0 %v4674_v39 }
 0x150   : > { %4277 = vmatpush3.bf16.msra.mxu1 %v4673_v41  ;;  %4341 = vmatpush3.bf16.msra.mxu0 %v4675_v42 }
 0x151   : > { %4278 = vmatprep.subr.bf16.mxu1 %v4676_v45  ;;  %4342 = vmatprep.subr.bf16.mxu0 %v4678_v12  ;;  %v4697_v12 = vld [vmem:[%s5148_s6 + $0x20] ss:$8 sps:$4 sm:$0xff]  }
 0x152   : > { %2069 = vmatmul.mubr.bf16.gmra.mrb[92].mxu1 %v5261_v55  ;;  %2344 = vmatmul.mubr.bf16.gmra.mrb[92].mxu0 %v5261_v55  ;;  %v5476_v55 = vld [vmem:[%s5148_s6 + $0x54] ss:$8 sps:$4 sm:$0xff]  }
 0x153   : > { %2076 = vmatprep.mubr.bf16.mxu1 %v5388_v8  ;;  %2351 = vmatprep.mubr.bf16.mxu0 %v5388_v8 }
 0x154   : > { %4279 = vmatpush3.bf16.msra.mxu1 %v4677_v19  ;;  %4343 = vmatpush3.bf16.msra.mxu0 %v4679_v43  ;;  %v4698_v19 = vld [vmem:[%s5148_s6 + $0x34] ss:$8 sps:$4 sm:$0xff]  }
 0x155   : > { %4280 = vmatprep.subr.bf16.mxu1 %v4680_v46  ;;  %4344 = vmatprep.subr.bf16.mxu0 %v4682_v50 }
 0x158   : > { %4281 = vmatpush3.bf16.msra.mxu1 %v4681_v47  ;;  %4345 = vmatpush3.bf16.msra.mxu0 %v4683_v48 }
 0x15a   : > { %2077 = vmatmul.mubr.bf16.gmra.mrb[96].mxu1 %v5397_v15  ;;  %2352 = vmatmul.mubr.bf16.gmra.mrb[96].mxu0 %v5397_v15 }
 0x15b   : > { %2084 = vmatprep.mubr.bf16.mxu1 %v5476_v55  ;;  %2359 = vmatprep.mubr.bf16.mxu0 %v5476_v55 }
 0x162   : > { %2085 = vmatmul.mubr.bf16.gmra.mrb[100].mxu1 %v5481_v49  ;;  %2360 = vmatmul.mubr.bf16.gmra.mrb[100].mxu0 %v5481_v49 }
 0x163   : > { %2092 = vmatprep.mubr.bf16.mxu1 %v5486_v52  ;;  %2367 = vmatprep.mubr.bf16.mxu0 %v5486_v52 }
 0x16a   : > { %2093 = vmatmul.mubr.bf16.gmra.mrb[104].mxu1 %v5491_v11  ;;  %2368 = vmatmul.mubr.bf16.gmra.mrb[104].mxu0 %v5491_v11 }
 0x16b   : > { %2100 = vmatprep.mubr.bf16.mxu1 %v5496_v53  ;;  %2375 = vmatprep.mubr.bf16.mxu0 %v5496_v53 }
 0x16d   : > { %v3834_v18 = vpop.f32.mrb[0].mxu0  ;;  %v3858_v54 = vpop.f32.mrb[0].mxu1 }
 0x16e   : > { %v3835_v57 = vpop.f32.mrb[1].mxu0  ;;  %v3859_v26 = vpop.f32.mrb[1].mxu1 }
 0x16f   : > { %v5500_v58 = vadd.f32 %v3835_v57, %v3834_v18  ;;  %v5502_v59 = vadd.f32 %v3859_v26, %v3858_v54  ;;  %v3837_v60 = vpop.f32.mrb[2].mxu0  ;;  %v3861_v61 = vpop.f32.mrb[2].mxu1 }
 0x170   : > { %v3838_v62 = vpop.f32.mrb[3].mxu0  ;;  %v3862_v31 = vpop.f32.mrb[3].mxu1 }
 0x171   : > { %v5504_v63 = vadd.f32 %v3838_v62, %v3837_v60  ;;  %v5506_v0 = vadd.f32 %v3862_v31, %v3861_v61 }
 0x172   : > { %2101 = vmatmul.mubr.bf16.gmra.mrb[108].mxu1 %v5509_v1  ;;  %2376 = vmatmul.mubr.bf16.gmra.mrb[108].mxu0 %v5509_v1 }
 0x173   : > { %2594 = vmatprep.mubr.bf16.mxu1 %v5414_v28  ;;  %2869 = vmatprep.mubr.bf16.mxu0 %v5414_v28 }
 0x175   : > { %v3840_v2 = vpop.f32.mrb[4].mxu0  ;;  %v3864_v3 = vpop.f32.mrb[4].mxu1 }
 0x176   : > { %v3841_v4 = vpop.f32.mrb[5].mxu0  ;;  %v3865_v5 = vpop.f32.mrb[5].mxu1 }
 0x177   : > { %v5515_v6 = vadd.f32 %v3841_v4, %v3840_v2  ;;  %v5517_v7 = vadd.f32 %v3865_v5, %v3864_v3  ;;  %v3843_v9 = vpop.f32.mrb[6].mxu0  ;;  %v3867_v10 = vpop.f32.mrb[6].mxu1  ;;  %v4699_v2 = vld [vmem:[%s5148_s6 + $0x30] ss:$8 sps:$4 sm:$0xff]  }
 0x178   : > { %v3844_v13 = vpop.f32.mrb[7].mxu0  ;;  %v3868_v14 = vpop.f32.mrb[7].mxu1 }
 0x179   : > { %v5519_v33 = vadd.f32 %v3844_v13, %v3843_v9  ;;  %v5521_v40 = vadd.f32 %v3868_v14, %v3867_v10 }
 0x17a   : > { %2595 = vmatmul.mubr.bf16.vlgmr.msra.gmra.mrb[112].mxu1 %v5423_v17  ;;  %2870 = vmatmul.mubr.bf16.vlgmr.msra.gmra.mrb[112].mxu0 %v5423_v17 }
 0x17b   : > { %2602 = vmatprep.mubr.bf16.mxu1 %v5430_v20  ;;  %2877 = vmatprep.mubr.bf16.mxu0 %v5430_v20  ;;  %v4696_v20 = vld [vmem:[%s5148_s6 + $0x24] ss:$8 sps:$4 sm:$0xff]  }
 0x17d   : > { %v3846_v28 = vpop.f32.mrb[8].mxu0  ;;  %v3870_v44 = vpop.f32.mrb[8].mxu1 }
 0x17e   : > { %v3847_v16 = vpop.f32.mrb[9].mxu0  ;;  %v3871_v51 = vpop.f32.mrb[9].mxu1 }
 0x17f   : > { %v5527_v56 = vadd.f32 %v3847_v16, %v3846_v28  ;;  %v5529_v21 = vadd.f32 %v3871_v51, %v3870_v44  ;;  %v3849_v22 = vpop.f32.mrb[10].mxu0  ;;  %v3873_v23 = vpop.f32.mrb[10].mxu1 }
 0x180   : > { %v3850_v24 = vpop.f32.mrb[11].mxu0  ;;  %v3874_v25 = vpop.f32.mrb[11].mxu1 }
 0x181   : > { %v5531_v27 = vadd.f32 %v3850_v24, %v3849_v22  ;;  %v5533_v17 = vadd.f32 %v3874_v25, %v3873_v23 }
 0x182   : > { %2603 = vmatmul.mubr.bf16.gmra.mrb[116].mxu1 %v5441_v29  ;;  %2878 = vmatmul.mubr.bf16.gmra.mrb[116].mxu0 %v5441_v29 }
 0x183   : > { %2610 = vmatprep.mubr.bf16.mxu1 %v4696_v20  ;;  %2885 = vmatprep.mubr.bf16.mxu0 %v4696_v20 }
 0x185   : > { %v3852_v30 = vpop.f32.mrb[12].mxu0  ;;  %v3876_v32 = vpop.f32.mrb[12].mxu1 }
 0x186   : > { %v3853_v34 = vpop.f32.mrb[13].mxu0  ;;  %v3877_v35 = vpop.f32.mrb[13].mxu1 }
 0x187   : > { %v5538_v36 = vadd.f32 %v3853_v34, %v3852_v30  ;;  %v5540_v37 = vadd.f32 %v3877_v35, %v3876_v32  ;;  %v3855_v38 = vpop.f32.mrb[14].mxu0  ;;  %v3879_v39 = vpop.f32.mrb[14].mxu1 }
 0x188   : > { %v3856_v41 = vpop.f32.mrb[15].mxu0  ;;  %v3880_v42 = vpop.f32.mrb[15].mxu1 }
 0x189   : > { %v5542_v45 = vadd.f32 %v3856_v41, %v3855_v38  ;;  %v5544_v29 = vadd.f32 %v3880_v42, %v3879_v39 }
 0x18a   : > { %2611 = vmatmul.mubr.bf16.gmra.mrb[120].mxu1 %v4697_v12  ;;  %2886 = vmatmul.mubr.bf16.gmra.mrb[120].mxu0 %v4697_v12 }
 0x18b   : > { %2618 = vmatprep.mubr.bf16.mxu1 %v4698_v19  ;;  %2893 = vmatprep.mubr.bf16.mxu0 %v4698_v19 }
 0x18d   : > { %v3898_v43 = vpop.f32.mrb[16].mxu1  ;;  %v3962_v46 = vpop.f32.mrb[16].mxu0 }
 0x18e   : > { %v3899_v50 = vpop.f32.mrb[17].mxu1  ;;  %v3963_v47 = vpop.f32.mrb[17].mxu0 }
 0x18f   : > { %v3900_v48 = vadd.f32 %v3899_v50, %v3898_v43  ;;  %v3964_v18 = vadd.f32 %v3963_v47, %v3962_v46  ;;  %v3901_v54 = vpop.f32.mrb[18].mxu1  ;;  %v3965_v57 = vpop.f32.mrb[18].mxu0 }
 0x190   : > { %v3902_v26 = vpop.f32.mrb[19].mxu1  ;;  %v3966_v60 = vpop.f32.mrb[19].mxu0 }
 0x191   : > { %v3001_v61 = vmax.f32 %v5500_v58, %v3900_v48  ;;  %v3903_v62 = vadd.f32 %v3902_v26, %v3901_v54  ;;  %v3967_v31 = vadd.f32 %v3966_v60, %v3965_v57 }
 0x192   : > { %2619 = vmatmul.mubr.bf16.gmra.mrb[124].mxu1 %v4699_v2  ;;  %2894 = vmatmul.mubr.bf16.gmra.mrb[124].mxu0 %v4699_v2 }
 0x193   : > { %v5550_v3 = vmax.f32 %v3001_v61, %v3964_v18  ;;  %v3002_v4 = vmax.f32 %v5504_v63, %v3903_v62  ;;  %2626 = vmatprep.mubr.bf16.mxu1 %v5388_v8  ;;  %2901 = vmatprep.mubr.bf16.mxu0 %v5388_v8 }
 0x195   : > { %v5555_v5 = vmax.f32 %v3002_v4, %v3967_v31  ;;  %v3904_v9 = vpop.f32.mrb[20].mxu1  ;;  %v3968_v10 = vpop.f32.mrb[20].mxu0 }
 0x196   : > { %v3905_v13 = vpop.f32.mrb[21].mxu1  ;;  %v3969_v14 = vpop.f32.mrb[21].mxu0 }
 0x197   : > { %v3906_v58 = vadd.f32 %v3905_v13, %v3904_v9  ;;  %v3970_v28 = vadd.f32 %v3969_v14, %v3968_v10  ;;  %v3907_v44 = vpop.f32.mrb[22].mxu1  ;;  %v3971_v16 = vpop.f32.mrb[22].mxu0 }
 0x198   : > { %v3908_v51 = vpop.f32.mrb[23].mxu1  ;;  %v3972_v22 = vpop.f32.mrb[23].mxu0 }
 0x199   : > { %v3003_v23 = vmax.f32 %v5515_v6, %v3906_v58  ;;  %v3909_v24 = vadd.f32 %v3908_v51, %v3907_v44  ;;  %v3973_v63 = vadd.f32 %v3972_v22, %v3971_v16 }
 0x19a   : > { %2627 = vmatmul.mubr.bf16.gmra.mrb[128].mxu1 %v5397_v15  ;;  %2902 = vmatmul.mubr.bf16.gmra.mrb[128].mxu0 %v5397_v15 }
 0x19b   : > { %v5560_v8 = vmax.f32 %v3003_v23, %v3970_v28  ;;  %v3004_v25 = vmax.f32 %v5519_v33, %v3909_v24  ;;  %2634 = vmatprep.mubr.bf16.mxu1 %v5476_v55  ;;  %2909 = vmatprep.mubr.bf16.mxu0 %v5476_v55 }
 0x19d   : > { %v5565_v20 = vmax.f32 %v3004_v25, %v3973_v63  ;;  %v3910_v30 = vpop.f32.mrb[24].mxu1  ;;  %v3974_v32 = vpop.f32.mrb[24].mxu0 }
 0x19e   : > { %v3911_v34 = vpop.f32.mrb[25].mxu1  ;;  %v3975_v6 = vpop.f32.mrb[25].mxu0 }
 0x19f   : > { %v3912_v35 = vadd.f32 %v3911_v34, %v3910_v30  ;;  %v3976_v38 = vadd.f32 %v3975_v6, %v3974_v32  ;;  %v3913_v39 = vpop.f32.mrb[26].mxu1  ;;  %v3977_v41 = vpop.f32.mrb[26].mxu0 }
 0x1a0   : > { %v3914_v42 = vpop.f32.mrb[27].mxu1  ;;  %v3978_v15 = vpop.f32.mrb[27].mxu0 }
 0x1a1   : > { %v3005_v12 = vmax.f32 %v5527_v56, %v3912_v35  ;;  %v3915_v19 = vadd.f32 %v3914_v42, %v3913_v39  ;;  %v3979_v33 = vadd.f32 %v3978_v15, %v3977_v41 }
 0x1a2   : > { %2635 = vmatmul.mubr.bf16.gmra.mrb[132].mxu1 %v5481_v49  ;;  %2910 = vmatmul.mubr.bf16.gmra.mrb[132].mxu0 %v5481_v49 }
 0x1a3   : > { %v5570_v55 = vmax.f32 %v3005_v12, %v3976_v38  ;;  %v3006_v43 = vmax.f32 %v5531_v27, %v3915_v19  ;;  %2642 = vmatprep.mubr.bf16.mxu1 %v5486_v52  ;;  %2917 = vmatprep.mubr.bf16.mxu0 %v5486_v52 }
 0x1a5   : > { %v5575_v46 = vmax.f32 %v3006_v43, %v3979_v33  ;;  %v3916_v50 = vpop.f32.mrb[28].mxu1  ;;  %v3980_v47 = vpop.f32.mrb[28].mxu0 }
 0x1a6   : > { %v3917_v48 = vpop.f32.mrb[29].mxu1  ;;  %v3981_v56 = vpop.f32.mrb[29].mxu0 }
 0x1a7   : > { %v3918_v18 = vadd.f32 %v3917_v48, %v3916_v50  ;;  %v3982_v54 = vadd.f32 %v3981_v56, %v3980_v47  ;;  %v3919_v57 = vpop.f32.mrb[30].mxu1  ;;  %v3983_v26 = vpop.f32.mrb[30].mxu0 }
 0x1a8   : > { %v3920_v60 = vpop.f32.mrb[31].mxu1  ;;  %v3984_v49 = vpop.f32.mrb[31].mxu0 }
 0x1a9   : > { %v3007_v61 = vmax.f32 %v5538_v36, %v3918_v18  ;;  %v3921_v62 = vadd.f32 %v3920_v60, %v3919_v57  ;;  %v3985_v27 = vadd.f32 %v3984_v49, %v3983_v26 }
 0x1aa   : > { %2643 = vmatmul.mubr.bf16.gmra.mrb[136].mxu1 %v5491_v11  ;;  %2918 = vmatmul.mubr.bf16.gmra.mrb[136].mxu0 %v5491_v11 }
 0x1ab   : > { %v5580_v52 = vmax.f32 %v3007_v61, %v3982_v54  ;;  %v3008_v31 = vmax.f32 %v5542_v45, %v3921_v62  ;;  %2650 = vmatprep.mubr.bf16.mxu1 %v5496_v53  ;;  %2925 = vmatprep.mubr.bf16.mxu0 %v5496_v53 }
 0x1ad   : > { %v5585_v2 = vmax.f32 %v3008_v31, %v3985_v27  ;;  %v3922_v4 = vpop.f32.mrb[32].mxu1  ;;  %v3986_v9 = vpop.f32.mrb[32].mxu0 }
 0x1ae   : > { %v3923_v10 = vpop.f32.mrb[33].mxu1  ;;  %v3987_v36 = vpop.f32.mrb[33].mxu0 }
 0x1af   : > { %v3924_v13 = vadd.f32 %v3923_v10, %v3922_v4  ;;  %v3988_v14 = vadd.f32 %v3987_v36, %v3986_v9  ;;  %v3925_v58 = vpop.f32.mrb[34].mxu1  ;;  %v3989_v28 = vpop.f32.mrb[34].mxu0 }
 0x1b0   : > { %v3926_v44 = vpop.f32.mrb[35].mxu1  ;;  %v3990_v11 = vpop.f32.mrb[35].mxu0 }
 0x1b1   : > { %v3009_v16 = vmax.f32 %v5502_v59, %v3924_v13  ;;  %v3927_v51 = vadd.f32 %v3926_v44, %v3925_v58  ;;  %v3991_v45 = vadd.f32 %v3990_v11, %v3989_v28 }
 0x1b2   : > { %2651 = vmatmul.mubr.bf16.gmra.mrb[140].mxu1 %v5509_v1  ;;  %2926 = vmatmul.mubr.bf16.gmra.mrb[140].mxu0 %v5509_v1 }
 0x1b3   : > { %v5590_v53 = vmax.f32 %v3009_v16, %v3988_v14  ;;  %v3010_v22 = vmax.f32 %v5506_v0, %v3927_v51 }
 0x1b5   : > { %v5593_v23 = vmax.f32 %v3010_v22, %v3991_v45  ;;  %v3928_v24 = vpop.f32.mrb[36].mxu1  ;;  %v3992_v63 = vpop.f32.mrb[36].mxu0 }
 0x1b6   : > { %v3929_v25 = vpop.f32.mrb[37].mxu1  ;;  %v3993_v30 = vpop.f32.mrb[37].mxu0 }
 0x1b7   : > { %v3930_v32 = vadd.f32 %v3929_v25, %v3928_v24  ;;  %v3994_v34 = vadd.f32 %v3993_v30, %v3992_v63  ;;  %v3931_v6 = vpop.f32.mrb[38].mxu1  ;;  %v3995_v59 = vpop.f32.mrb[38].mxu0 }
 0x1b8   : > { %v3932_v35 = vpop.f32.mrb[39].mxu1  ;;  %v3996_v38 = vpop.f32.mrb[39].mxu0 }
 0x1b9   : > { %v3011_v39 = vmax.f32 %v5517_v7, %v3930_v32  ;;  %v3933_v41 = vadd.f32 %v3932_v35, %v3931_v6  ;;  %v3997_v1 = vadd.f32 %v3996_v38, %v3995_v59 }
 0x1bb   : > { %v5596_v42 = vmax.f32 %v3011_v39, %v3994_v34  ;;  %v3012_v0 = vmax.f32 %v5521_v40, %v3933_v41 }
 0x1bd   : > { %v5599_v15 = vmax.f32 %v3012_v0, %v3997_v1  ;;  %v3934_v12 = vpop.f32.mrb[40].mxu1  ;;  %v3998_v19 = vpop.f32.mrb[40].mxu0 }
 0x1be   : > { %v3935_v33 = vpop.f32.mrb[41].mxu1  ;;  %v3999_v43 = vpop.f32.mrb[41].mxu0 }
 0x1bf   : > { %v3936_v50 = vadd.f32 %v3935_v33, %v3934_v12  ;;  %v4000_v47 = vadd.f32 %v3999_v43, %v3998_v19  ;;  %v3937_v48 = vpop.f32.mrb[42].mxu1  ;;  %v4001_v56 = vpop.f32.mrb[42].mxu0 }
 0x1c0   : > { %v3938_v18 = vpop.f32.mrb[43].mxu1  ;;  %v4002_v54 = vpop.f32.mrb[43].mxu0 }
 0x1c1   : > { %v3013_v7 = vmax.f32 %v5529_v21, %v3936_v50  ;;  %v3939_v57 = vadd.f32 %v3938_v18, %v3937_v48  ;;  %v4003_v26 = vadd.f32 %v4002_v54, %v4001_v56 }
 0x1c3   : > { %v5602_v60 = vmax.f32 %v3013_v7, %v4000_v47  ;;  %v3014_v40 = vmax.f32 %v5533_v17, %v3939_v57 }
 0x1c5   : > { %v5605_v49 = vmax.f32 %v3014_v40, %v4003_v26  ;;  %v3940_v61 = vpop.f32.mrb[44].mxu1  ;;  %v4004_v62 = vpop.f32.mrb[44].mxu0 }
 0x1c6   : > { %v3941_v27 = vpop.f32.mrb[45].mxu1  ;;  %v4005_v31 = vpop.f32.mrb[45].mxu0 }
 0x1c7   : > { %v3942_v4 = vadd.f32 %v3941_v27, %v3940_v61  ;;  %v4006_v9 = vadd.f32 %v4005_v31, %v4004_v62  ;;  %v3943_v10 = vpop.f32.mrb[46].mxu1  ;;  %v4007_v36 = vpop.f32.mrb[46].mxu0 }
 0x1c8   : > { %v3944_v13 = vpop.f32.mrb[47].mxu1  ;;  %v4008_v14 = vpop.f32.mrb[47].mxu0 }
 0x1c9   : > { %v3015_v21 = vmax.f32 %v5540_v37, %v3942_v4  ;;  %v3945_v58 = vadd.f32 %v3944_v13, %v3943_v10  ;;  %v4009_v28 = vadd.f32 %v4008_v14, %v4007_v36 }
 0x1cb   : > { %v5608_v44 = vmax.f32 %v3015_v21, %v4006_v9  ;;  %v3016_v17 = vmax.f32 %v5544_v29, %v3945_v58 }
 0x1cd   : > { %v5611_v11 = vmax.f32 %v3016_v17, %v4009_v28  ;;  %v4026_v16 = vpop.f32.mrb[48].mxu1  ;;  %v4090_v51 = vpop.f32.mrb[48].mxu0 }
 0x1ce   : > { %v4027_v45 = vpop.f32.mrb[49].mxu1  ;;  %v4091_v22 = vpop.f32.mrb[49].mxu0 }
 0x1cf   : > { %v4028_v24 = vadd.f32 %v4027_v45, %v4026_v16  ;;  %v4092_v63 = vadd.f32 %v4091_v22, %v4090_v51  ;;  %v4029_v25 = vpop.f32.mrb[50].mxu1  ;;  %v4093_v30 = vpop.f32.mrb[50].mxu0 }
 0x1d0   : > { %v4030_v32 = vpop.f32.mrb[51].mxu1  ;;  %v4094_v34 = vpop.f32.mrb[51].mxu0 }
 0x1d1   : > { %v3065_v37 = vmax.f32 %v5550_v3, %v4028_v24  ;;  %v4031_v6 = vadd.f32 %v4030_v32, %v4029_v25  ;;  %v4095_v59 = vadd.f32 %v4094_v34, %v4093_v30 }
 0x1d3   : > { %v5614_v35 = vmax.f32 %v3065_v37, %v4092_v63  ;;  %v3066_v29 = vmax.f32 %v5555_v5, %v4031_v6 }
 0x1d5   : > { %v5617_v38 = vmax.f32 %v3066_v29, %v4095_v59  ;;  %v4032_v39 = vpop.f32.mrb[52].mxu1  ;;  %v4096_v41 = vpop.f32.mrb[52].mxu0 }
 0x1d6   : > { %v4033_v1 = vpop.f32.mrb[53].mxu1  ;;  %v4097_v0 = vpop.f32.mrb[53].mxu0 }
 0x1d7   : > { %v4034_v12 = vadd.f32 %v4033_v1, %v4032_v39  ;;  %v4098_v19 = vadd.f32 %v4097_v0, %v4096_v41  ;;  %v4035_v33 = vpop.f32.mrb[54].mxu1  ;;  %v4099_v43 = vpop.f32.mrb[54].mxu0 }
 0x1d8   : > { %v4036_v50 = vpop.f32.mrb[55].mxu1  ;;  %v4100_v47 = vpop.f32.mrb[55].mxu0 }
 0x1d9   : > { %v3067_v3 = vmax.f32 %v5560_v8, %v4034_v12  ;;  %v4037_v48 = vadd.f32 %v4036_v50, %v4035_v33  ;;  %v4101_v56 = vadd.f32 %v4100_v47, %v4099_v43 }
 0x1db   : > { %v5620_v18 = vmax.f32 %v3067_v3, %v4098_v19  ;;  %v3068_v5 = vmax.f32 %v5565_v20, %v4037_v48 }
 0x1dd   : > { %v5623_v54 = vmax.f32 %v3068_v5, %v4101_v56  ;;  %v4038_v7 = vpop.f32.mrb[56].mxu1  ;;  %v4102_v57 = vpop.f32.mrb[56].mxu0 }
 0x1de   : > { %v4039_v26 = vpop.f32.mrb[57].mxu1  ;;  %v4103_v40 = vpop.f32.mrb[57].mxu0 }
 0x1df   : > { %v4040_v61 = vadd.f32 %v4039_v26, %v4038_v7  ;;  %v4104_v62 = vadd.f32 %v4103_v40, %v4102_v57  ;;  %v4041_v27 = vpop.f32.mrb[58].mxu1  ;;  %v4105_v31 = vpop.f32.mrb[58].mxu0 }
 0x1e0   : > { %v4042_v4 = vpop.f32.mrb[59].mxu1  ;;  %v4106_v9 = vpop.f32.mrb[59].mxu0 }
 0x1e1   : > { %v3069_v8 = vmax.f32 %v5570_v55, %v4040_v61  ;;  %v4043_v10 = vadd.f32 %v4042_v4, %v4041_v27  ;;  %v4107_v36 = vadd.f32 %v4106_v9, %v4105_v31 }
 0x1e3   : > { %v5626_v13 = vmax.f32 %v3069_v8, %v4104_v62  ;;  %v3070_v20 = vmax.f32 %v5575_v46, %v4043_v10 }
 0x1e5   : > { %v5629_v14 = vmax.f32 %v3070_v20, %v4107_v36  ;;  %v4044_v21 = vpop.f32.mrb[60].mxu1  ;;  %v4108_v58 = vpop.f32.mrb[60].mxu0 }
 0x1e6   : > { %v4045_v28 = vpop.f32.mrb[61].mxu1  ;;  %v4109_v17 = vpop.f32.mrb[61].mxu0 }
 0x1e7   : > { %v4046_v16 = vadd.f32 %v4045_v28, %v4044_v21  ;;  %v4110_v51 = vadd.f32 %v4109_v17, %v4108_v58  ;;  %v4047_v45 = vpop.f32.mrb[62].mxu1  ;;  %v4111_v22 = vpop.f32.mrb[62].mxu0 }
 0x1e8   : > { %v4048_v24 = vpop.f32.mrb[63].mxu1  ;;  %v4112_v63 = vpop.f32.mrb[63].mxu0 }
 0x1e9   : > { %v3071_v55 = vmax.f32 %v5580_v52, %v4046_v16  ;;  %v4049_v25 = vadd.f32 %v4048_v24, %v4047_v45  ;;  %v4113_v30 = vadd.f32 %v4112_v63, %v4111_v22 }
 0x1eb   : > { %v5632_v32 = vmax.f32 %v3071_v55, %v4110_v51  ;;  %v3072_v46 = vmax.f32 %v5585_v2, %v4049_v25 }
 0x1ed   : > { %v5635_v34 = vmax.f32 %v3072_v46, %v4113_v30  ;;  %v4050_v37 = vpop.f32.mrb[64].mxu1  ;;  %v4114_v6 = vpop.f32.mrb[64].mxu0 }
 0x1ee   : > { %v4051_v59 = vpop.f32.mrb[65].mxu1  ;;  %v4115_v29 = vpop.f32.mrb[65].mxu0 }
 0x1ef   : > { %v4052_v39 = vadd.f32 %v4051_v59, %v4050_v37  ;;  %v4116_v41 = vadd.f32 %v4115_v29, %v4114_v6  ;;  %v4053_v1 = vpop.f32.mrb[66].mxu1  ;;  %v4117_v0 = vpop.f32.mrb[66].mxu0 }
 0x1f0   : > { %v4054_v12 = vpop.f32.mrb[67].mxu1  ;;  %v4118_v19 = vpop.f32.mrb[67].mxu0 }
 0x1f1   : > { %v3073_v52 = vmax.f32 %v5590_v53, %v4052_v39  ;;  %v4055_v33 = vadd.f32 %v4054_v12, %v4053_v1  ;;  %v4119_v43 = vadd.f32 %v4118_v19, %v4117_v0 }
 0x1f3   : > { %v5638_v50 = vmax.f32 %v3073_v52, %v4116_v41  ;;  %v3074_v2 = vmax.f32 %v5593_v23, %v4055_v33 }
 0x1f5   : > { %v5641_v47 = vmax.f32 %v3074_v2, %v4119_v43  ;;  %v4056_v3 = vpop.f32.mrb[68].mxu1  ;;  %v4120_v48 = vpop.f32.mrb[68].mxu0 }
 0x1f6   : > { %v4057_v56 = vpop.f32.mrb[69].mxu1  ;;  %v4121_v5 = vpop.f32.mrb[69].mxu0 }
 0x1f7   : > { %v4058_v7 = vadd.f32 %v4057_v56, %v4056_v3  ;;  %v4122_v57 = vadd.f32 %v4121_v5, %v4120_v48  ;;  %v4059_v26 = vpop.f32.mrb[70].mxu1  ;;  %v4123_v40 = vpop.f32.mrb[70].mxu0 }
 0x1f8   : > { %v4060_v61 = vpop.f32.mrb[71].mxu1  ;;  %v4124_v62 = vpop.f32.mrb[71].mxu0 }
 0x1f9   : > { %v3075_v53 = vmax.f32 %v5596_v42, %v4058_v7  ;;  %v4061_v27 = vadd.f32 %v4060_v61, %v4059_v26  ;;  %v4125_v31 = vadd.f32 %v4124_v62, %v4123_v40 }
 0x1fb   : > { %v5644_v4 = vmax.f32 %v3075_v53, %v4122_v57  ;;  %v3076_v23 = vmax.f32 %v5599_v15, %v4061_v27 }
 0x1fd   : > { %v5647_v9 = vmax.f32 %v3076_v23, %v4125_v31  ;;  %v4062_v8 = vpop.f32.mrb[72].mxu1  ;;  %v4126_v10 = vpop.f32.mrb[72].mxu0 }
 0x1fe   : > { %v4063_v36 = vpop.f32.mrb[73].mxu1  ;;  %v4127_v20 = vpop.f32.mrb[73].mxu0 }
 0x1ff   : > { %v4064_v21 = vadd.f32 %v4063_v36, %v4062_v8  ;;  %v4128_v58 = vadd.f32 %v4127_v20, %v4126_v10  ;;  %v4065_v28 = vpop.f32.mrb[74].mxu1  ;;  %v4129_v17 = vpop.f32.mrb[74].mxu0 }
 0x200   : > { %v4066_v16 = vpop.f32.mrb[75].mxu1  ;;  %v4130_v51 = vpop.f32.mrb[75].mxu0 }
 0x201   : > { %v3077_v42 = vmax.f32 %v5602_v60, %v4064_v21  ;;  %v4067_v45 = vadd.f32 %v4066_v16, %v4065_v28  ;;  %v4131_v22 = vadd.f32 %v4130_v51, %v4129_v17 }
 0x203   : > { %v5650_v24 = vmax.f32 %v3077_v42, %v4128_v58  ;;  %v3078_v15 = vmax.f32 %v5605_v49, %v4067_v45 }
 0x205   : > { %v5653_v63 = vmax.f32 %v3078_v15, %v4131_v22  ;;  %v4068_v55 = vpop.f32.mrb[76].mxu1  ;;  %v4132_v25 = vpop.f32.mrb[76].mxu0 }
 0x206   : > { %v4069_v30 = vpop.f32.mrb[77].mxu1  ;;  %v4133_v46 = vpop.f32.mrb[77].mxu0 }
 0x207   : > { %v4070_v37 = vadd.f32 %v4069_v30, %v4068_v55  ;;  %v4134_v6 = vadd.f32 %v4133_v46, %v4132_v25  ;;  %v4071_v59 = vpop.f32.mrb[78].mxu1  ;;  %v4135_v29 = vpop.f32.mrb[78].mxu0 }
 0x208   : > { %v4072_v39 = vpop.f32.mrb[79].mxu1  ;;  %v4136_v41 = vpop.f32.mrb[79].mxu0 }
 0x209   : > { %v3079_v60 = vmax.f32 %v5608_v44, %v4070_v37  ;;  %v4073_v1 = vadd.f32 %v4072_v39, %v4071_v59  ;;  %v4137_v0 = vadd.f32 %v4136_v41, %v4135_v29 }
 0x20b   : > { %v5656_v12 = vmax.f32 %v3079_v60, %v4134_v6  ;;  %v3080_v49 = vmax.f32 %v5611_v11, %v4073_v1 }
 0x20d   : > { %v5659_v19 = vmax.f32 %v3080_v49, %v4137_v0  ;;  %v4154_v52 = vpop.f32.mrb[80].mxu1  ;;  %v4218_v33 = vpop.f32.mrb[80].mxu0 }
 0x20e   : > { %v4155_v43 = vpop.f32.mrb[81].mxu1  ;;  %v4219_v2 = vpop.f32.mrb[81].mxu0 }
 0x20f   : > { %v4156_v3 = vadd.f32 %v4155_v43, %v4154_v52  ;;  %v4220_v48 = vadd.f32 %v4219_v2, %v4218_v33  ;;  %v4157_v56 = vpop.f32.mrb[82].mxu1  ;;  %v4221_v5 = vpop.f32.mrb[82].mxu0 }
 0x210   : > { %v4158_v7 = vpop.f32.mrb[83].mxu1  ;;  %v4222_v57 = vpop.f32.mrb[83].mxu0 }
 0x211   : > { %v3129_v44 = vmax.f32 %v5614_v35, %v4156_v3  ;;  %v4159_v26 = vadd.f32 %v4158_v7, %v4157_v56  ;;  %v4223_v40 = vadd.f32 %v4222_v57, %v4221_v5 }
 0x213   : > { %v5662_v61 = vmax.f32 %v3129_v44, %v4220_v48  ;;  %v3130_v11 = vmax.f32 %v5617_v38, %v4159_v26 }
 0x215   : > { %v5665_v62 = vmax.f32 %v3130_v11, %v4223_v40  ;;  %v4160_v53 = vpop.f32.mrb[84].mxu1  ;;  %v4224_v27 = vpop.f32.mrb[84].mxu0 }
 0x216   : > { %v4161_v31 = vpop.f32.mrb[85].mxu1  ;;  %v4225_v23 = vpop.f32.mrb[85].mxu0 }
 0x217   : > { %v4162_v8 = vadd.f32 %v4161_v31, %v4160_v53  ;;  %v4226_v10 = vadd.f32 %v4225_v23, %v4224_v27  ;;  %v4163_v36 = vpop.f32.mrb[86].mxu1  ;;  %v4227_v20 = vpop.f32.mrb[86].mxu0 }
 0x218   : > { %v4164_v21 = vpop.f32.mrb[87].mxu1  ;;  %v4228_v58 = vpop.f32.mrb[87].mxu0 }
 0x219   : > { %v3131_v35 = vmax.f32 %v5620_v18, %v4162_v8  ;;  %v4165_v28 = vadd.f32 %v4164_v21, %v4163_v36  ;;  %v4229_v17 = vadd.f32 %v4228_v58, %v4227_v20 }
 0x21b   : > { %v5668_v16 = vmax.f32 %v3131_v35, %v4226_v10  ;;  %v3132_v38 = vmax.f32 %v5623_v54, %v4165_v28 }
 0x21d   : > { %v5671_v51 = vmax.f32 %v3132_v38, %v4229_v17  ;;  %v4166_v42 = vpop.f32.mrb[88].mxu1  ;;  %v4230_v45 = vpop.f32.mrb[88].mxu0 }
 0x21e   : > { %v4167_v22 = vpop.f32.mrb[89].mxu1  ;;  %v4231_v15 = vpop.f32.mrb[89].mxu0 }
 0x21f   : > { %v4168_v55 = vadd.f32 %v4167_v22, %v4166_v42  ;;  %v4232_v25 = vadd.f32 %v4231_v15, %v4230_v45  ;;  %v4169_v30 = vpop.f32.mrb[90].mxu1  ;;  %v4233_v46 = vpop.f32.mrb[90].mxu0 }
 0x220   : > { %v4170_v37 = vpop.f32.mrb[91].mxu1  ;;  %v4234_v6 = vpop.f32.mrb[91].mxu0 }
 0x221   : > { %v3133_v18 = vmax.f32 %v5626_v13, %v4168_v55  ;;  %v4171_v59 = vadd.f32 %v4170_v37, %v4169_v30  ;;  %v4235_v29 = vadd.f32 %v4234_v6, %v4233_v46 }
 0x223   : > { %v5674_v39 = vmax.f32 %v3133_v18, %v4232_v25  ;;  %v3134_v54 = vmax.f32 %v5629_v14, %v4171_v59 }
 0x225   : > { %v5677_v41 = vmax.f32 %v3134_v54, %v4235_v29  ;;  %v4172_v60 = vpop.f32.mrb[92].mxu1  ;;  %v4236_v1 = vpop.f32.mrb[92].mxu0 }
 0x226   : > { %v4173_v0 = vpop.f32.mrb[93].mxu1  ;;  %v4237_v49 = vpop.f32.mrb[93].mxu0 }
 0x227   : > { %v4174_v52 = vadd.f32 %v4173_v0, %v4172_v60  ;;  %v4238_v33 = vadd.f32 %v4237_v49, %v4236_v1  ;;  %v4175_v43 = vpop.f32.mrb[94].mxu1  ;;  %v4239_v2 = vpop.f32.mrb[94].mxu0 }
 0x228   : > { %v4176_v3 = vpop.f32.mrb[95].mxu1  ;;  %v4240_v48 = vpop.f32.mrb[95].mxu0 }
 0x229   : > { %v3135_v13 = vmax.f32 %v5632_v32, %v4174_v52  ;;  %v4177_v56 = vadd.f32 %v4176_v3, %v4175_v43  ;;  %v4241_v5 = vadd.f32 %v4240_v48, %v4239_v2 }
 0x22b   : > { %v5680_v7 = vmax.f32 %v3135_v13, %v4238_v33  ;;  %v3136_v14 = vmax.f32 %v5635_v34, %v4177_v56 }
 0x22d   : > { %v5683_v57 = vmax.f32 %v3136_v14, %v4241_v5  ;;  %v4178_v44 = vpop.f32.mrb[96].mxu1  ;;  %v4242_v26 = vpop.f32.mrb[96].mxu0 }
 0x22e   : > { %v4179_v40 = vpop.f32.mrb[97].mxu1  ;;  %v4243_v11 = vpop.f32.mrb[97].mxu0 }
 0x22f   : > { %v4180_v53 = vadd.f32 %v4179_v40, %v4178_v44  ;;  %v4244_v27 = vadd.f32 %v4243_v11, %v4242_v26  ;;  %v4181_v31 = vpop.f32.mrb[98].mxu1  ;;  %v4245_v23 = vpop.f32.mrb[98].mxu0 }
 0x230   : > { %v4182_v8 = vpop.f32.mrb[99].mxu1  ;;  %v4246_v10 = vpop.f32.mrb[99].mxu0 }
 0x231   : > { %v3137_v32 = vmax.f32 %v5638_v50, %v4180_v53  ;;  %v4183_v36 = vadd.f32 %v4182_v8, %v4181_v31  ;;  %v4247_v20 = vadd.f32 %v4246_v10, %v4245_v23 }
 0x233   : > { %v5686_v21 = vmax.f32 %v3137_v32, %v4244_v27  ;;  %v3138_v34 = vmax.f32 %v5641_v47, %v4183_v36 }
 0x235   : > { %v5689_v58 = vmax.f32 %v3138_v34, %v4247_v20  ;;  %v4184_v35 = vpop.f32.mrb[100].mxu1  ;;  %v4248_v28 = vpop.f32.mrb[100].mxu0 }
 0x236   : > { %v4185_v17 = vpop.f32.mrb[101].mxu1  ;;  %v4249_v38 = vpop.f32.mrb[101].mxu0 }
 0x237   : > { %v4186_v42 = vadd.f32 %v4185_v17, %v4184_v35  ;;  %v4250_v45 = vadd.f32 %v4249_v38, %v4248_v28  ;;  %v4187_v22 = vpop.f32.mrb[102].mxu1  ;;  %v4251_v15 = vpop.f32.mrb[102].mxu0 }
 0x238   : > { %v4188_v55 = vpop.f32.mrb[103].mxu1  ;;  %v4252_v25 = vpop.f32.mrb[103].mxu0 }
 0x239   : > { %v3139_v50 = vmax.f32 %v5644_v4, %v4186_v42  ;;  %v4189_v30 = vadd.f32 %v4188_v55, %v4187_v22  ;;  %v4253_v46 = vadd.f32 %v4252_v25, %v4251_v15 }
 0x23b   : > { %v5692_v37 = vmax.f32 %v3139_v50, %v4250_v45  ;;  %v3140_v47 = vmax.f32 %v5647_v9, %v4189_v30 }
 0x23d   : > { %v5695_v6 = vmax.f32 %v3140_v47, %v4253_v46  ;;  %v4190_v18 = vpop.f32.mrb[104].mxu1  ;;  %v4254_v59 = vpop.f32.mrb[104].mxu0 }
 0x23e   : > { %v4191_v29 = vpop.f32.mrb[105].mxu1  ;;  %v4255_v54 = vpop.f32.mrb[105].mxu0 }
 0x23f   : > { %v4192_v60 = vadd.f32 %v4191_v29, %v4190_v18  ;;  %v4256_v1 = vadd.f32 %v4255_v54, %v4254_v59  ;;  %v4193_v0 = vpop.f32.mrb[106].mxu1  ;;  %v4257_v49 = vpop.f32.mrb[106].mxu0 }
 0x240   : > { %v4194_v52 = vpop.f32.mrb[107].mxu1  ;;  %v4258_v33 = vpop.f32.mrb[107].mxu0 }
 0x241   : > { %v3141_v4 = vmax.f32 %v5650_v24, %v4192_v60  ;;  %v4195_v43 = vadd.f32 %v4194_v52, %v4193_v0  ;;  %v4259_v2 = vadd.f32 %v4258_v33, %v4257_v49 }
 0x243   : > { %v5698_v3 = vmax.f32 %v3141_v4, %v4256_v1  ;;  %v3142_v9 = vmax.f32 %v5653_v63, %v4195_v43 }
 0x245   : > { %v5701_v48 = vmax.f32 %v3142_v9, %v4259_v2  ;;  %v4196_v13 = vpop.f32.mrb[108].mxu1  ;;  %v4260_v56 = vpop.f32.mrb[108].mxu0 }
 0x246   : > { %v4197_v5 = vpop.f32.mrb[109].mxu1  ;;  %v4261_v14 = vpop.f32.mrb[109].mxu0 }
 0x247   : > { %v4198_v44 = vadd.f32 %v4197_v5, %v4196_v13  ;;  %v4262_v26 = vadd.f32 %v4261_v14, %v4260_v56  ;;  %v4199_v40 = vpop.f32.mrb[110].mxu1  ;;  %v4263_v11 = vpop.f32.mrb[110].mxu0 }
 0x248   : > { %v4200_v53 = vpop.f32.mrb[111].mxu1  ;;  %v4264_v27 = vpop.f32.mrb[111].mxu0 }
 0x249   : > { %v3143_v24 = vmax.f32 %v5656_v12, %v4198_v44  ;;  %v4201_v31 = vadd.f32 %v4200_v53, %v4199_v40  ;;  %v4265_v23 = vadd.f32 %v4264_v27, %v4263_v11 }
 0x24b   : > { %v5704_v8 = vmax.f32 %v3143_v24, %v4262_v26  ;;  %v3144_v63 = vmax.f32 %v5659_v19, %v4201_v31 }
 0x24d   : > { %v5707_v10 = vmax.f32 %v3144_v63, %v4265_v23  ;;  %v4282_v32 = vpop.f32.mrb[112].mxu1  ;;  %v4346_v36 = vpop.f32.mrb[112].mxu0 }
 0x24e   : > { %v4283_v20 = vpop.f32.mrb[113].mxu1  ;;  %v4347_v34 = vpop.f32.mrb[113].mxu0 }
 0x24f   : > { %v4284_v35 = vadd.f32 %v4283_v20, %v4282_v32  ;;  %v4348_v28 = vadd.f32 %v4347_v34, %v4346_v36  ;;  %v4285_v17 = vpop.f32.mrb[114].mxu1  ;;  %v4349_v38 = vpop.f32.mrb[114].mxu0 }
 0x250   : > { %v4286_v42 = vpop.f32.mrb[115].mxu1  ;;  %v4350_v45 = vpop.f32.mrb[115].mxu0 }
 0x251   : > { %v3193_v12 = vmax.f32 %v5662_v61, %v4284_v35  ;;  %v4287_v22 = vadd.f32 %v4286_v42, %v4285_v17  ;;  %v4351_v15 = vadd.f32 %v4350_v45, %v4349_v38 }
 0x253   : > { %v3225_v55 = vmax.f32 %v3193_v12, %v4348_v28  ;;  %v3194_v19 = vmax.f32 %v5665_v62, %v4287_v22 }
 0x255   : > { %3241 = vst [vmem:[%s5712_s11] sm:$0xff] %v3225_v55  ;;  %v3226_v25 = vmax.f32 %v3194_v19, %v4351_v15  ;;  %v4288_v50 = vpop.f32.mrb[116].mxu1  ;;  %v4352_v30 = vpop.f32.mrb[116].mxu0 }
 0x256   : > { %v4289_v46 = vpop.f32.mrb[117].mxu1  ;;  %v4353_v47 = vpop.f32.mrb[117].mxu0 }
 0x257   : > { %3242 = vst [vmem:[%s5712_s11 + $0x8] sm:$0xff] %v3226_v25  ;;  %v4290_v18 = vadd.f32 %v4289_v46, %v4288_v50  ;;  %v4354_v59 = vadd.f32 %v4353_v47, %v4352_v30  ;;  %v4291_v61 = vpop.f32.mrb[118].mxu1  ;;  %v4355_v29 = vpop.f32.mrb[118].mxu0 }
 0x258   : > { %v4292_v54 = vpop.f32.mrb[119].mxu1  ;;  %v4356_v60 = vpop.f32.mrb[119].mxu0 }
 0x259   : > { %v3195_v62 = vmax.f32 %v5668_v16, %v4290_v18  ;;  %v4293_v1 = vadd.f32 %v4292_v54, %v4291_v61  ;;  %v4357_v0 = vadd.f32 %v4356_v60, %v4355_v29 }
 0x25b   : > { %v3227_v49 = vmax.f32 %v3195_v62, %v4354_v59  ;;  %v3196_v52 = vmax.f32 %v5671_v51, %v4293_v1 }
 0x25d   : > { %3243 = vst [vmem:[%s5712_s11 + $0x10] sm:$0xff] %v3227_v49  ;;  %v3228_v33 = vmax.f32 %v3196_v52, %v4357_v0  ;;  %v4294_v4 = vpop.f32.mrb[120].mxu1  ;;  %v4358_v43 = vpop.f32.mrb[120].mxu0 }
 0x25e   : > { %v4295_v2 = vpop.f32.mrb[121].mxu1  ;;  %v4359_v9 = vpop.f32.mrb[121].mxu0 }
 0x25f   : > { %3244 = vst [vmem:[%s5712_s11 + $0x18] sm:$0xff] %v3228_v33  ;;  %v4296_v13 = vadd.f32 %v4295_v2, %v4294_v4  ;;  %v4360_v56 = vadd.f32 %v4359_v9, %v4358_v43  ;;  %v4297_v5 = vpop.f32.mrb[122].mxu1  ;;  %v4361_v14 = vpop.f32.mrb[122].mxu0 }
 0x260   : > { %v4298_v44 = vpop.f32.mrb[123].mxu1  ;;  %v4362_v16 = vpop.f32.mrb[123].mxu0 }
 0x261   : > { %v3197_v26 = vmax.f32 %v5674_v39, %v4296_v13  ;;  %v4299_v40 = vadd.f32 %v4298_v44, %v4297_v5  ;;  %v4363_v11 = vadd.f32 %v4362_v16, %v4361_v14 }
 0x263   : > { %v3229_v51 = vmax.f32 %v3197_v26, %v4360_v56  ;;  %v3198_v53 = vmax.f32 %v5677_v41, %v4299_v40 }
 0x265   : > { %3245 = vst [vmem:[%s5712_s11 + $0x20] sm:$0xff] %v3229_v51  ;;  %v3230_v27 = vmax.f32 %v3198_v53, %v4363_v11  ;;  %v4300_v24 = vpop.f32.mrb[124].mxu1  ;;  %v4364_v31 = vpop.f32.mrb[124].mxu0 }
 0x266   : > { %v4301_v23 = vpop.f32.mrb[125].mxu1  ;;  %v4365_v63 = vpop.f32.mrb[125].mxu0 }
 0x267   : > { %3246 = vst [vmem:[%s5712_s11 + $0x28] sm:$0xff] %v3230_v27  ;;  %v4302_v32 = vadd.f32 %v4301_v23, %v4300_v24  ;;  %v4366_v36 = vadd.f32 %v4365_v63, %v4364_v31  ;;  %v4303_v20 = vpop.f32.mrb[126].mxu1  ;;  %v4367_v34 = vpop.f32.mrb[126].mxu0 }
 0x268   : > { %v4304_v35 = vpop.f32.mrb[127].mxu1  ;;  %v4368_v39 = vpop.f32.mrb[127].mxu0 }
 0x269   : > { %v3199_v28 = vmax.f32 %v5680_v7, %v4302_v32  ;;  %v4305_v17 = vadd.f32 %v4304_v35, %v4303_v20  ;;  %v4369_v38 = vadd.f32 %v4368_v39, %v4367_v34 }
 0x26b   : > { %v3231_v41 = vmax.f32 %v3199_v28, %v4366_v36  ;;  %v3200_v42 = vmax.f32 %v5683_v57, %v4305_v17 }
 0x26d   : > { %3247 = vst [vmem:[%s5712_s11 + $0x30] sm:$0xff] %v3231_v41  ;;  %v3232_v45 = vmax.f32 %v3200_v42, %v4369_v38  ;;  %v4306_v12 = vpop.f32.mrb[128].mxu1  ;;  %v4370_v22 = vpop.f32.mrb[128].mxu0 }
 0x26e   : > { %v4307_v15 = vpop.f32.mrb[129].mxu1  ;;  %v4371_v55 = vpop.f32.mrb[129].mxu0 }
 0x26f   : > { %3248 = vst [vmem:[%s5712_s11 + $0x38] sm:$0xff] %v3232_v45  ;;  %v4308_v19 = vadd.f32 %v4307_v15, %v4306_v12  ;;  %v4372_v25 = vadd.f32 %v4371_v55, %v4370_v22  ;;  %v4309_v50 = vpop.f32.mrb[130].mxu1  ;;  %v4373_v30 = vpop.f32.mrb[130].mxu0 }
 0x270   : > { %v4310_v46 = vpop.f32.mrb[131].mxu1  ;;  %v4374_v7 = vpop.f32.mrb[131].mxu0 }
 0x271   : > { %v3201_v47 = vmax.f32 %v5686_v21, %v4308_v19  ;;  %v4311_v18 = vadd.f32 %v4310_v46, %v4309_v50  ;;  %v4375_v59 = vadd.f32 %v4374_v7, %v4373_v30 }
 0x273   : > { %v3233_v57 = vmax.f32 %v3201_v47, %v4372_v25  ;;  %v3202_v61 = vmax.f32 %v5689_v58, %v4311_v18 }
 0x275   : > { %3249 = vst [vmem:[%s5712_s11 + $0x40] sm:$0xff] %v3233_v57  ;;  %v3234_v29 = vmax.f32 %v3202_v61, %v4375_v59  ;;  %v4312_v54 = vpop.f32.mrb[132].mxu1  ;;  %v4376_v60 = vpop.f32.mrb[132].mxu0 }
 0x276   : > { %v4313_v62 = vpop.f32.mrb[133].mxu1  ;;  %v4377_v1 = vpop.f32.mrb[133].mxu0 }
 0x277   : > { %3250 = vst [vmem:[%s5712_s11 + $0x48] sm:$0xff] %v3234_v29  ;;  %v4314_v0 = vadd.f32 %v4313_v62, %v4312_v54  ;;  %v4378_v49 = vadd.f32 %v4377_v1, %v4376_v60  ;;  %v4315_v52 = vpop.f32.mrb[134].mxu1  ;;  %v4379_v33 = vpop.f32.mrb[134].mxu0 }
 0x278   : > { %v4316_v4 = vpop.f32.mrb[135].mxu1  ;;  %v4380_v21 = vpop.f32.mrb[135].mxu0 }
 0x279   : > { %v3203_v43 = vmax.f32 %v5692_v37, %v4314_v0  ;;  %v4317_v2 = vadd.f32 %v4316_v4, %v4315_v52  ;;  %v4381_v9 = vadd.f32 %v4380_v21, %v4379_v33 }
 0x27b   : > { %v3235_v58 = vmax.f32 %v3203_v43, %v4378_v49  ;;  %v3204_v13 = vmax.f32 %v5695_v6, %v4317_v2 }
 0x27d   : > { %3251 = vst [vmem:[%s5712_s11 + $0x50] sm:$0xff] %v3235_v58  ;;  %v3236_v56 = vmax.f32 %v3204_v13, %v4381_v9  ;;  %v4318_v5 = vpop.f32.mrb[136].mxu1  ;;  %v4382_v14 = vpop.f32.mrb[136].mxu0 }
 0x27e   : > { %v4319_v44 = vpop.f32.mrb[137].mxu1  ;;  %v4383_v16 = vpop.f32.mrb[137].mxu0 }
 0x27f   : > { %3252 = vst [vmem:[%s5712_s11 + $0x58] sm:$0xff] %v3236_v56  ;;  %v4320_v26 = vadd.f32 %v4319_v44, %v4318_v5  ;;  %v4384_v40 = vadd.f32 %v4383_v16, %v4382_v14  ;;  %v4321_v11 = vpop.f32.mrb[138].mxu1  ;;  %v4385_v51 = vpop.f32.mrb[138].mxu0 }
 0x280   : > { %v4322_v53 = vpop.f32.mrb[139].mxu1  ;;  %v4386_v37 = vpop.f32.mrb[139].mxu0 }
 0x281   : > { %v3205_v27 = vmax.f32 %v5698_v3, %v4320_v26  ;;  %v4323_v24 = vadd.f32 %v4322_v53, %v4321_v11  ;;  %v4387_v31 = vadd.f32 %v4386_v37, %v4385_v51 }
 0x283   : > { %v3237_v6 = vmax.f32 %v3205_v27, %v4384_v40  ;;  %v3206_v23 = vmax.f32 %v5701_v48, %v4323_v24 }
 0x285   : > { %3253 = vst [vmem:[%s5712_s11 + $0x60] sm:$0xff] %v3237_v6  ;;  %v3238_v63 = vmax.f32 %v3206_v23, %v4387_v31  ;;  %v4324_v32 = vpop.f32.mrb[140].mxu1  ;;  %v4388_v36 = vpop.f32.mrb[140].mxu0 }
 0x286   : > { %v4325_v20 = vpop.f32.mrb[141].mxu1  ;;  %v4389_v34 = vpop.f32.mrb[141].mxu0 }
 0x287   : > { %3254 = vst [vmem:[%s5712_s11 + $0x68] sm:$0xff] %v3238_v63  ;;  %v4326_v35 = vadd.f32 %v4325_v20, %v4324_v32  ;;  %v4390_v39 = vadd.f32 %v4389_v34, %v4388_v36  ;;  %v4327_v28 = vpop.f32.mrb[142].mxu1  ;;  %v4391_v3 = vpop.f32.mrb[142].mxu0 }
 0x288   : > { %v4328_v17 = vpop.f32.mrb[143].mxu1  ;;  %v4392_v38 = vpop.f32.mrb[143].mxu0 }
 0x289   : > { %v3207_v48 = vmax.f32 %v5704_v8, %v4326_v35  ;;  %v4329_v41 = vadd.f32 %v4328_v17, %v4327_v28  ;;  %v4393_v42 = vadd.f32 %v4392_v38, %v4391_v3 }
 0x28b   : > { %v3239_v45 = vmax.f32 %v3207_v48, %v4390_v39  ;;  %v3208_v12 = vmax.f32 %v5707_v10, %v4329_v41 }
 0x28d   : > { %3255 = vst [vmem:[%s5712_s11 + $0x70] sm:$0xff] %v3239_v45  ;;  %v3240_v22 = vmax.f32 %v3208_v12, %v4393_v42 }
 0x28f   : > { %3256 = vst [vmem:[%s5712_s11 + $0x78] sm:$0xff] %v3240_v22 }
 0x290   : > { %4783 = shalt.err (!%p4780_p1)
}
 0x291   : > { %s4784_s6 = scalar_lea.hbm %s5747_s19, 2048  ;;  %s4788_s8 = scalar_lea.hbm %s5812_s3, 4096 }
 0x292   : > { %p4785_p5 = scmp.ne.s32.totalorder %s5747_s19, %s4784_s6  ;;  %p4789_p2 = scmp.lt.u32.totalorder %s5747_s19, %s5812_s3 }
 0x293   : > { %p4790_p9 = scmp.lt.u32.totalorder %s4788_s8, %s4784_s6  ;;  %p4792_p4 = scmp.lt.u32.totalorder %s4784_s6, %s5747_s19 }
 0x294   : > { %p4786_p10 = pnand %p4785_p5, %p5835_p12 }
 0x295   : > { %p4791_p8 = por %p4790_p9, %p4789_p2 }
 0x296   : > { %p4787_p11 = pneg %p4786_p10 }
 0x297   : > { %p4793_p0 = por %p4792_p4, %p4791_p8 }
 0x299   : > { %p4794_p7 = pnand %p4793_p0, %p4787_p11 }
 0x29b   : > { %4797 = shalt.err (!%p4794_p7)
}
 0x29c   : > { %s4892_s5 = smov 128   ;;  %s4893_s20 = smov 256  }
 0x29d   : > { %s4894_s1 = smov 8  }
 0x29e   : > { %4419 = dma.vmem_to_hbm [thread:$0]  (%p5835_p12), %s5749_s9, 2048, %s5747_s19, %s3258_s27, %s4892_s5, %s4893_s20, %s4894_s1  }
 0x29f PF: > { %s3288_s7 = sand.u32 1, %s4850_s22   ;;  %p5836_p6 = scmp.ne.s32.totalorder %s5830_s16, 0 }
 0x2a0   : > { %p5837_p13 = scmp.ge.s32.totalorder %s4882_s29, 2  ;;  %s3289_s14 = scalar_lea.sflag [#allocation7], %s3288_s7 }
 0x2a2   : > { %p4431_p3 = pnand %p5837_p13, %p5836_p6 }
 0x2a4   : > { %4845 = dma.done.wait (!%p4431_p3), %s3289_s14, 2048  }
 0x2a5   : > { %4847 = vsyncadd (!%p4431_p3), %s3289_s14, 4294965248  ;;  %s26_s29 = sadd.s32 1, %s4882_s29   ;;  %s5838_s22 = smov %s4854_s23 }
 0x2a6   : > { %p23_p1 = scmp.ge.s32.totalorder %s26_s29, 4   ;;  %s5839_s23 = smov %s4858_s24 }
 0x2a7   : > { %s5840_s24 = smov %s5076_s12  ;;  %s5841_s25 = smov %s4866_s26 }
 0x2a8   : > { %s5842_s26 = smov %s4870_s0  ;;  %s5843_s0 = smov %s5015_s18 }
 0x2a9   : > { %s5844_s27 = smov %s4878_s28  ;;  %s5845_s28 = smov %s5847_s4 }
 0x2aa   :  { %25 = sbr.rel (!%p23_p1) target bundleno = 22 (0x16), region = 110 }
 0x2b1   :  { %3294 = vsyncpa [#allocation6], 1 }
 0x2b2   :  { %3296 = vsyncpa [#allocation6 + $0x1], 1 }
 0x2b3   :  { %3297 = vsyncpa [#allocation9], 1 }
 0x2b4   :  { %3299 = vsyncpa [#allocation9 + $0x1], 1 }
 0x2b5   :  { %3300 = vsyncpa [#allocation7], 1 }
 0x2b6   :  { %3302 = vsyncpa [#allocation7 + $0x1], 1 }

</bundles_post_ra>
